<compile_context>
chip_gen: v5e
topology: v5e:2x2
jax: 0.10.0
libtpu: 0.0.40
codegen_flags: <defaults>
</compile_context>

<pallas_src>
import jax
import jax.numpy as jnp
from jax import lax
from jax.experimental import pallas as pl
from jax.experimental.pallas import tpu as pltpu


# ----------------------------------------------------------------------------
# Pallas kernel: one grid step == Nb images of the batch.
# All convolutions are expressed as matmuls on the MXU:
#   * 1x1 conv  -> [Nb*H*W, Cin] @ [Cin, Cout]          (bf16 in, f32 acc)
#   * 3x3 conv  -> single im2col matmul
#                  [Nb*H*W, 9*Cmid] @ [9*Cmid, Cmid]    (bf16 in, f32 acc)
# ----------------------------------------------------------------------------
def bottleneck_kernel(x_ref, w1_ref, b1_ref, w2_ref, b2_ref,
                      w3_ref, b3_ref, out_ref):
    Nb, H, W, Cin = x_ref.shape
    Cmid = w1_ref.shape[1]
    M = Nb * H * W

    # identity path kept in f32
    x_f32 = x_ref[...].reshape(M, Cin)

    # --- conv1 (1x1, BN1 scale folded into weights) + bias + ReLU ----------
    h1 = jnp.dot(x_f32.astype(jnp.bfloat16), w1_ref[...],
                 preferred_element_type=jnp.float32)
    h1 = jnp.maximum(h1 + b1_ref[...], 0.0)                  # [M, Cmid] f32

    # --- conv2 (3x3, stride=1, pad=1) as ONE im2col matmul ------------------
    h1_4d = h1.reshape(Nb, H, W, Cmid)
    zc = jnp.zeros((Nb, H, 1, Cmid), jnp.float32)
    hp = jnp.concatenate([zc, h1_4d, zc], axis=2)            # [Nb, H, W+2, Cmid]
    zr = jnp.zeros((Nb, 1, W + 2, Cmid), jnp.float32)
    hp = jnp.concatenate([zr, hp, zr], axis=1)               # [Nb, H+2, W+2, Cmid]
    patches = jnp.concatenate(
        [hp[:, dy:dy + H, dx:dx + W, :]
         for dy in range(3) for dx in range(3)], axis=-1)    # [Nb, H, W, 9*Cmid]
    patches = patches.reshape(M, 9 * Cmid).astype(jnp.bfloat16)
    h2 = jnp.dot(patches, w2_ref[...],                       # K = 9*Cmid
                 preferred_element_type=jnp.float32)
    h2 = jnp.maximum(h2 + b2_ref[...], 0.0)                  # [M, Cmid] f32

    # --- conv3 (1x1) + bias + residual add + ReLU ---------------------------
    h3 = jnp.dot(h2.astype(jnp.bfloat16), w3_ref[...],
                 preferred_element_type=jnp.float32)
    out = jnp.maximum(h3 + b3_ref[...] + x_f32, 0.0)
    out_ref[...] = out.reshape(Nb, H, W, Cin)


# ----------------------------------------------------------------------------
# One-time parameter preparation (outside the per-call path): transpose conv
# weights into matmul layout, fold eval-mode BN scale into them, cast to bf16.
# ----------------------------------------------------------------------------
def fold_bn(gamma, beta, mean, var, eps=1e-5):
    scale = gamma / jnp.sqrt(var + eps)
    bias = beta - mean * scale
    return scale.astype(jnp.float32), bias.astype(jnp.float32)


def prepare_params(params):
    w1_t, w2_t, w3_t = params["w1"], params["w2"], params["w3"]
    Cmid = w1_t.shape[0]

    s1, b1 = fold_bn(*params["bn1"])
    s2, b2 = fold_bn(*params["bn2"])
    s3, b3 = fold_bn(*params["bn3"])

    # torch conv weights are [O, I, kh, kw]
    w1 = (jnp.transpose(w1_t[:, :, 0, 0], (1, 0)) * s1[None, :]).astype(jnp.bfloat16)
    w2 = (jnp.transpose(w2_t, (2, 3, 1, 0)).reshape(9 * Cmid, Cmid)
          * s2[None, :]).astype(jnp.bfloat16)                # [(ky,kx,ci), co]
    w3 = (jnp.transpose(w3_t[:, :, 0, 0], (1, 0)) * s3[None, :]).astype(jnp.bfloat16)

    return {
        "w1": w1, "b1": b1.reshape(1, -1),
        "w2": w2, "b2": b2.reshape(1, -1),
        "w3": w3, "b3": b3.reshape(1, -1),
    }


def _pick_block_n(n, hw, target_m=256):
    """Largest batch block whose M=Nb*hw reaches target, keeping >=2 grid steps."""
    divs = [d for d in range(1, n + 1) if n % d == 0]
    # keep at least 2 grid steps when possible so both v7x TensorCores get work
    cands = [d for d in divs if n // d >= 2] or divs
    for d in cands:
        if d * hw >= target_m:
            return d
    return cands[-1]


@jax.jit
def bottleneck_forward_nhwc(x_nhwc, prep):
    """x_nhwc: [N, H, W, Cin] float32. Returns NHWC float32 output."""
    N, H, W, Cin = x_nhwc.shape
    Nb = _pick_block_n(N, H * W)

    def full(arr):
        return pl.BlockSpec(arr.shape, lambda n: (0,) * arr.ndim)

    return pl.pallas_call(
        bottleneck_kernel,
        out_shape=jax.ShapeDtypeStruct((N, H, W, Cin), jnp.float32),
        grid_spec=pltpu.PrefetchScalarGridSpec(
            num_scalar_prefetch=0,
            grid=(N // Nb,),
            in_specs=[
                pl.BlockSpec((Nb, H, W, Cin), lambda n: (n, 0, 0, 0)),
                full(prep["w1"]), full(prep["b1"]),
                full(prep["w2"]), full(prep["b2"]),
                full(prep["w3"]), full(prep["b3"]),
            ],
            out_specs=pl.BlockSpec((Nb, H, W, Cin), lambda n: (n, 0, 0, 0)),
        ),
        compiler_params=pltpu.CompilerParams(
            dimension_semantics=("parallel",)),
    )(x_nhwc, prep["w1"], prep["b1"], prep["w2"], prep["b2"],
      prep["w3"], prep["b3"])


def bottleneck_forward_nchw(x_nchw, prep):
    """Convenience PyTorch-layout wrapper (pays transposes at the boundary)."""
    x_nhwc = jnp.transpose(x_nchw, (0, 2, 3, 1)).astype(jnp.float32)
    out = bottleneck_forward_nhwc(x_nhwc, prep)
    return jnp.transpose(out, (0, 3, 1, 2))


# ----------------------------------------------------------------------------
# Pure-JAX f32 reference (eval-mode BN), used only for the correctness check.
# ----------------------------------------------------------------------------
def ref_forward(x, params, eps=1e-5):
    dn = ("NCHW", "OIHW", "NCHW")

    def bn(h, p):
        g, b, m, v = p
        g, b, m, v = (a[None, :, None, None] for a in (g, b, m, v))
        return (h - m) / jnp.sqrt(v + eps) * g + b

    h = lax.conv_general_dilated(x, params["w1"], (1, 1), "VALID",
                                 dimension_numbers=dn)
    h = jax.nn.relu(bn(h, params["bn1"]))
    h = lax.conv_general_dilated(h, params["w2"], (1, 1), ((1, 1), (1, 1)),
                                 dimension_numbers=dn)
    h = jax.nn.relu(bn(h, params["bn2"]))
    h = lax.conv_general_dilated(h, params["w3"], (1, 1), "VALID",
                                 dimension_numbers=dn)
    h = bn(h, params["bn3"])
    return jax.nn.relu(h + x)


def init_params(key, inplanes, planes):
    ks = jax.random.split(key, 6)
    exp = 4

    def bn_params(k, c):
        k0, k1, k2, k3 = jax.random.split(k, 4)
        gamma = 1.0 + 0.1 * jax.random.normal(k0, (c,), jnp.float32)
        beta = 0.1 * jax.random.normal(k1, (c,), jnp.float32)
        mean = 0.1 * jax.random.normal(k2, (c,), jnp.float32)
        var = jax.random.uniform(k3, (c,), jnp.float32, 0.5, 1.5)
        return (gamma, beta, mean, var)

    return {
        "w1": 0.05 * jax.random.normal(ks[0], (planes, inplanes, 1, 1), jnp.float32),
        "bn1": bn_params(ks[1], planes),
        "w2": 0.05 * jax.random.normal(ks[2], (planes, planes, 3, 3), jnp.float32),
        "bn2": bn_params(ks[3], planes),
        "w3": 0.05 * jax.random.normal(ks[4], (planes * exp, planes, 1, 1), jnp.float32),
        "bn3": bn_params(ks[5], planes * exp),
    }


if __name__ == "__main__":
    # downsample=None, stride=1  =>  inplanes must equal planes * expansion
    N, planes, H, W = 8, 32, 8, 8
    inplanes = planes * 4  # 128

    key = jax.random.PRNGKey(0)
    kx, kp = jax.random.split(key)
    # activations stay NHWC end-to-end
    x_nhwc = jax.random.normal(kx, (N, H, W, inplanes), jnp.float32)
    params = init_params(kp, inplanes, planes)

    prep = prepare_params(params)          # one-time weight prep (BN folded, bf16)
    out_nhwc = jax.block_until_ready(bottleneck_forward_nhwc(x_nhwc, prep))

    # reference in PyTorch NCHW layout, f32 convs
    x_nchw = jnp.transpose(x_nhwc, (0, 3, 1, 2))
    ref_nchw = jax.block_until_ready(ref_forward(x_nchw, params))
    ref_nhwc = jnp.transpose(ref_nchw, (0, 2, 3, 1))

    assert out_nhwc.shape == ref_nhwc.shape == (N, H, W, inplanes)
    max_err = float(jnp.max(jnp.abs(out_nhwc - ref_nhwc)))
    # bf16 MXU inputs (f32 accumulation) vs. f32 reference -> slightly looser tol
    assert jnp.allclose(out_nhwc, ref_nhwc, rtol=3e-2, atol=3e-2), max_err

    print("KERNEL_OK")
</pallas_src>

<mosaic_0001>
module attributes {stable_mosaic.version = 11 : i64} {
  func.func @bottleneck_kernel(%arg0: i32, %arg1: memref<4x8x8x128xf32, #tpu.memory_space<vmem>>, %arg2: memref<128x32xbf16, #tpu.memory_space<vmem>>, %arg3: memref<1x32xf32, #tpu.memory_space<vmem>>, %arg4: memref<288x32xbf16, #tpu.memory_space<vmem>>, %arg5: memref<1x32xf32, #tpu.memory_space<vmem>>, %arg6: memref<32x128xbf16, #tpu.memory_space<vmem>>, %arg7: memref<1x128xf32, #tpu.memory_space<vmem>>, %arg8: memref<4x8x8x128xf32, #tpu.memory_space<vmem>>) attributes {dimension_semantics = [#tpu.dimension_semantics<parallel>], iteration_bounds = array<i64: 2>, scalar_prefetch = 0 : i64, scratch_operands = 0 : i64, tpu.core_type = #tpu.core_type<tc>, window_params = [{transform_indices = @transform_0, window_bounds = array<i64: 4, 8, 8, 128>}, {pipeline_mode = #tpu.pipeline_mode<synchronous>, transform_indices = @transform_1, window_bounds = array<i64: 128, 32>}, {pipeline_mode = #tpu.pipeline_mode<synchronous>, transform_indices = @transform_2, window_bounds = array<i64: 1, 32>}, {pipeline_mode = #tpu.pipeline_mode<synchronous>, transform_indices = @transform_3, window_bounds = array<i64: 288, 32>}, {pipeline_mode = #tpu.pipeline_mode<synchronous>, transform_indices = @transform_4, window_bounds = array<i64: 1, 32>}, {pipeline_mode = #tpu.pipeline_mode<synchronous>, transform_indices = @transform_5, window_bounds = array<i64: 32, 128>}, {pipeline_mode = #tpu.pipeline_mode<synchronous>, transform_indices = @transform_6, window_bounds = array<i64: 1, 128>}, {transform_indices = @transform_7, window_bounds = array<i64: 4, 8, 8, 128>}]} {
    %c0 = arith.constant 0 : index
    %c0_0 = arith.constant 0 : index
    %c0_1 = arith.constant 0 : index
    %c0_2 = arith.constant 0 : index
    %0 = vector.load %arg1[%c0, %c0_0, %c0_1, %c0_2] : memref<4x8x8x128xf32, #tpu.memory_space<vmem>>, vector<4x8x8x128xf32>
    %1 = vector.shape_cast %0 : vector<4x8x8x128xf32> to vector<256x128xf32>
    %2 = arith.truncf %1 : vector<256x128xf32> to vector<256x128xbf16>
    %c0_3 = arith.constant 0 : index
    %c0_4 = arith.constant 0 : index
    %3 = vector.load %arg2[%c0_3, %c0_4] : memref<128x32xbf16, #tpu.memory_space<vmem>>, vector<128x32xbf16>
    %cst = arith.constant dense<0.000000e+00> : vector<256x32xf32>
    %4 = tpu.matmul %2, %3, %cst {dimension_numbers = #tpu.dot_dimension_numbers<[1], [0], [0], [1], [0, 0, 1, 1], [], []>} : vector<256x128xbf16>, vector<128x32xbf16>, vector<256x32xf32> -> vector<256x32xf32>
    %c0_5 = arith.constant 0 : index
    %c0_6 = arith.constant 0 : index
    %5 = vector.load %arg3[%c0_5, %c0_6] : memref<1x32xf32, #tpu.memory_space<vmem>>, vector<1x32xf32>
    %6 = vector.broadcast %5 : vector<1x32xf32> to vector<256x32xf32>
    %7 = arith.addf %4, %6 : vector<256x32xf32>
    %cst_7 = arith.constant 0.000000e+00 : f32
    %8 = vector.broadcast %cst_7 : f32 to vector<256x32xf32>
    %9 = arith.maximumf %7, %8 : vector<256x32xf32>
    %10 = vector.shape_cast %9 : vector<256x32xf32> to vector<4x8x8x32xf32>
    %cst_8 = arith.constant 0.000000e+00 : f32
    %11 = vector.broadcast %cst_8 : f32 to vector<4x8x1x32xf32>
    %12 = tpu.concatenate %11, %10, %11 in 2 : vector<4x8x1x32xf32>, vector<4x8x8x32xf32>, vector<4x8x1x32xf32> -> vector<4x8x10x32xf32>
    %cst_9 = arith.constant 0.000000e+00 : f32
    %13 = vector.broadcast %cst_9 : f32 to vector<4x1x10x32xf32>
    %14 = tpu.concatenate %13, %12, %13 in 1 : vector<4x1x10x32xf32>, vector<4x8x10x32xf32>, vector<4x1x10x32xf32> -> vector<4x10x10x32xf32>
    %15 = vector.extract_strided_slice %14 {offsets = [0, 0, 0, 0], sizes = [4, 8, 8, 32], strides = [1, 1, 1, 1]} : vector<4x10x10x32xf32> to vector<4x8x8x32xf32>
    %16 = vector.extract_strided_slice %14 {offsets = [0, 0, 1, 0], sizes = [4, 8, 8, 32], strides = [1, 1, 1, 1]} : vector<4x10x10x32xf32> to vector<4x8x8x32xf32>
    %17 = vector.extract_strided_slice %14 {offsets = [0, 0, 2, 0], sizes = [4, 8, 8, 32], strides = [1, 1, 1, 1]} : vector<4x10x10x32xf32> to vector<4x8x8x32xf32>
    %18 = vector.extract_strided_slice %14 {offsets = [0, 1, 0, 0], sizes = [4, 8, 8, 32], strides = [1, 1, 1, 1]} : vector<4x10x10x32xf32> to vector<4x8x8x32xf32>
    %19 = vector.extract_strided_slice %14 {offsets = [0, 1, 1, 0], sizes = [4, 8, 8, 32], strides = [1, 1, 1, 1]} : vector<4x10x10x32xf32> to vector<4x8x8x32xf32>
    %20 = vector.extract_strided_slice %14 {offsets = [0, 1, 2, 0], sizes = [4, 8, 8, 32], strides = [1, 1, 1, 1]} : vector<4x10x10x32xf32> to vector<4x8x8x32xf32>
    %21 = vector.extract_strided_slice %14 {offsets = [0, 2, 0, 0], sizes = [4, 8, 8, 32], strides = [1, 1, 1, 1]} : vector<4x10x10x32xf32> to vector<4x8x8x32xf32>
    %22 = vector.extract_strided_slice %14 {offsets = [0, 2, 1, 0], sizes = [4, 8, 8, 32], strides = [1, 1, 1, 1]} : vector<4x10x10x32xf32> to vector<4x8x8x32xf32>
    %23 = vector.extract_strided_slice %14 {offsets = [0, 2, 2, 0], sizes = [4, 8, 8, 32], strides = [1, 1, 1, 1]} : vector<4x10x10x32xf32> to vector<4x8x8x32xf32>
    %24 = tpu.concatenate %15, %16, %17, %18, %19, %20, %21, %22, %23 in 3 : vector<4x8x8x32xf32>, vector<4x8x8x32xf32>, vector<4x8x8x32xf32>, vector<4x8x8x32xf32>, vector<4x8x8x32xf32>, vector<4x8x8x32xf32>, vector<4x8x8x32xf32>, vector<4x8x8x32xf32>, vector<4x8x8x32xf32> -> vector<4x8x8x288xf32>
    %25 = vector.shape_cast %24 : vector<4x8x8x288xf32> to vector<256x288xf32>
    %26 = arith.truncf %25 : vector<256x288xf32> to vector<256x288xbf16>
    %c0_10 = arith.constant 0 : index
    %c0_11 = arith.constant 0 : index
    %27 = vector.load %arg4[%c0_10, %c0_11] : memref<288x32xbf16, #tpu.memory_space<vmem>>, vector<288x32xbf16>
    %cst_12 = arith.constant dense<0.000000e+00> : vector<256x32xf32>
    %28 = tpu.matmul %26, %27, %cst_12 {dimension_numbers = #tpu.dot_dimension_numbers<[1], [0], [0], [1], [0, 0, 1, 1], [], []>} : vector<256x288xbf16>, vector<288x32xbf16>, vector<256x32xf32> -> vector<256x32xf32>
    %c0_13 = arith.constant 0 : index
    %c0_14 = arith.constant 0 : index
    %29 = vector.load %arg5[%c0_13, %c0_14] : memref<1x32xf32, #tpu.memory_space<vmem>>, vector<1x32xf32>
    %30 = vector.broadcast %29 : vector<1x32xf32> to vector<256x32xf32>
    %31 = arith.addf %28, %30 : vector<256x32xf32>
    %cst_15 = arith.constant 0.000000e+00 : f32
    %32 = vector.broadcast %cst_15 : f32 to vector<256x32xf32>
    %33 = arith.maximumf %31, %32 : vector<256x32xf32>
    %34 = arith.truncf %33 : vector<256x32xf32> to vector<256x32xbf16>
    %c0_16 = arith.constant 0 : index
    %c0_17 = arith.constant 0 : index
    %35 = vector.load %arg6[%c0_16, %c0_17] : memref<32x128xbf16, #tpu.memory_space<vmem>>, vector<32x128xbf16>
    %cst_18 = arith.constant dense<0.000000e+00> : vector<256x128xf32>
    %36 = tpu.matmul %34, %35, %cst_18 {dimension_numbers = #tpu.dot_dimension_numbers<[1], [0], [0], [1], [0, 0, 1, 1], [], []>} : vector<256x32xbf16>, vector<32x128xbf16>, vector<256x128xf32> -> vector<256x128xf32>
    %c0_19 = arith.constant 0 : index
    %c0_20 = arith.constant 0 : index
    %37 = vector.load %arg7[%c0_19, %c0_20] : memref<1x128xf32, #tpu.memory_space<vmem>>, vector<1x128xf32>
    %38 = vector.broadcast %37 : vector<1x128xf32> to vector<256x128xf32>
    %39 = arith.addf %36, %38 : vector<256x128xf32>
    %40 = arith.addf %39, %1 : vector<256x128xf32>
    %cst_21 = arith.constant 0.000000e+00 : f32
    %41 = vector.broadcast %cst_21 : f32 to vector<256x128xf32>
    %42 = arith.maximumf %40, %41 : vector<256x128xf32>
    %43 = vector.shape_cast %42 : vector<256x128xf32> to vector<4x8x8x128xf32>
    %c0_22 = arith.constant 0 : index
    %c0_23 = arith.constant 0 : index
    %c0_24 = arith.constant 0 : index
    %c0_25 = arith.constant 0 : index
    %44 = vector.load %arg8[%c0_22, %c0_23, %c0_24, %c0_25] : memref<4x8x8x128xf32, #tpu.memory_space<vmem>>, vector<4x8x8x128xf32>
    tpu.vector_store %arg8[%c0_22, %c0_23, %c0_24, %c0_25], %43 {strides = array<i32>} : memref<4x8x8x128xf32, #tpu.memory_space<vmem>>, vector<4x8x8x128xf32>,
    return
  }
  func.func @transform_0(%arg0: i32) -> (i32, i32, i32, i32) {
    %c0_i32 = arith.constant 0 : i32
    %c0_i32_0 = arith.constant 0 : i32
    %c0_i32_1 = arith.constant 0 : i32
    %c0_i32_2 = arith.constant 0 : i32
    return %arg0, %c0_i32, %c0_i32_0, %c0_i32_1 : i32, i32, i32, i32
  }
  func.func @transform_1(%arg0: i32) -> (i32, i32) {
    %c0_i32 = arith.constant 0 : i32
    %c0_i32_0 = arith.constant 0 : i32
    %c0_i32_1 = arith.constant 0 : i32
    return %c0_i32, %c0_i32_0 : i32, i32
  }
  func.func @transform_2(%arg0: i32) -> (i32, i32) {
    %c0_i32 = arith.constant 0 : i32
    %c0_i32_0 = arith.constant 0 : i32
    %c0_i32_1 = arith.constant 0 : i32
    return %c0_i32, %c0_i32_0 : i32, i32
  }
  func.func @transform_3(%arg0: i32) -> (i32, i32) {
    %c0_i32 = arith.constant 0 : i32
    %c0_i32_0 = arith.constant 0 : i32
    %c0_i32_1 = arith.constant 0 : i32
    return %c0_i32, %c0_i32_0 : i32, i32
  }
  func.func @transform_4(%arg0: i32) -> (i32, i32) {
    %c0_i32 = arith.constant 0 : i32
    %c0_i32_0 = arith.constant 0 : i32
    %c0_i32_1 = arith.constant 0 : i32
    return %c0_i32, %c0_i32_0 : i32, i32
  }
  func.func @transform_5(%arg0: i32) -> (i32, i32) {
    %c0_i32 = arith.constant 0 : i32
    %c0_i32_0 = arith.constant 0 : i32
    %c0_i32_1 = arith.constant 0 : i32
    return %c0_i32, %c0_i32_0 : i32, i32
  }
  func.func @transform_6(%arg0: i32) -> (i32, i32) {
    %c0_i32 = arith.constant 0 : i32
    %c0_i32_0 = arith.constant 0 : i32
    %c0_i32_1 = arith.constant 0 : i32
    return %c0_i32, %c0_i32_0 : i32, i32
  }
  func.func @transform_7(%arg0: i32) -> (i32, i32, i32, i32) {
    %c0_i32 = arith.constant 0 : i32
    %c0_i32_0 = arith.constant 0 : i32
    %c0_i32_1 = arith.constant 0 : i32
    %c0_i32_2 = arith.constant 0 : i32
    return %arg0, %c0_i32, %c0_i32_0, %c0_i32_1 : i32, i32, i32, i32
  }
}

</mosaic_0001>

<bundles_post_ra>
// kernel: bottleneck_forward_nhwc.1
= control target key start
LH: loop header
LB: loop body
LE: loop exit
PB: predicated region body
PF: predicated region fallthrough
CT: control target
= control target key end

     0   :  { %12 = vsyncpa [#allocation3], 0  ;;  %s5178_s0 = inlined_call_operand.hbm [shape: f32[8,8,8,128], index: 0, kind: input, shape index: {}]   ;;  %s5179_s1 = inlined_call_operand.vmem [shape: bf16[128,32], index: 1, kind: input, shape index: {}]   ;;  %s5180_s2 = inlined_call_operand.vmem [shape: f32[1,32], index: 2, kind: input, shape index: {}]   ;;  %s5181_s3 = inlined_call_operand.vmem [shape: bf16[288,32], index: 3, kind: input, shape index: {}]   ;;  %s5182_s4 = inlined_call_operand.vmem [shape: f32[1,32], index: 4, kind: input, shape index: {}]   ;;  %s5183_s5 = inlined_call_operand.vmem [shape: bf16[32,128], index: 5, kind: input, shape index: {}]   ;;  %s5184_s6 = inlined_call_operand.vmem [shape: f32[1,128], index: 6, kind: input, shape index: {}]   ;;  %s5185_s7 = inlined_call_operand.hbm [shape: f32[8,8,8,128], index: 7, kind: output, shape index: {}]  }
   0x1   :  { %14 = vsyncpa [#allocation3 + $0x1], 0 }
   0x2   :  { %15 = vsyncpa [#allocation4], 0 }
   0x3   :  { %17 = vsyncpa [#allocation4 + $0x1], 0  ;;  %s3548_s24 = smov 0   ;;  %s3550_s25 = smov 0  }
   0x4   :  { %s3552_s26 = smov 0   ;;  %s3554_s27 = smov 0  }
   0x5 LB: > { %s3569_s28 = sadd.s32 4294967295, %s3498_s27   ;;  %s2656_s29 = sadd.s32 4294967294, %s3498_s27   ;;  %s3498_s27 = sphi %s3554_s27, %s5250_s27   ;;  %s3494_s26 = sphi %s3552_s26, %s5249_s26   ;;  %s3490_s25 = sphi %s3550_s25, %s5248_s25   ;;  %s3486_s24 = sphi %s3548_s24, %s5247_s24  }
   0x6   : > { %s3573_s30 = sadd.s32 1, %s3498_s27   ;;  %s30_s8 = sadd.s32 1, %s3494_s26 }
   0x7   : > { %s27_s9 = ssub.s32 %s3498_s27, %s3573_s30  ;;  %p37_p0 = scmp.ne.s32.totalorder %s3494_s26, %s3490_s25 }
   0x8   : > { %p28_p1 = scmp.eq.s32.totalorder %s27_s9, 0  ;;  %p38_p2 = scmp.eq.s32.totalorder %s3498_s27, 0 }
   0x9   : > { %p43_p3 = scmp.ne.s32.totalorder %s3490_s25, %s3486_s24  ;;  %p44_p4 = scmp.eq.s32.totalorder %s3569_s28, 0 }
   0xa   : > { %s3585_s10 = scalar_select %p28_p1, %s3494_s26, %s30_s8  }
   0xb   : > { %p3587_p5 = por %p38_p2, %p37_p0  ;;  %p3591_p6 = por %p44_p4, %p43_p3 }
   0xc   : > { %5203 = sst [smem:[#allocation8_spill]] %s3585_s10  ;;  %p193_p7 = scmp.eq.s32.totalorder %s3569_s28, 1 }
   0xd   : > { %p199_p8 = scmp.eq.s32.totalorder %s2656_s29, 1  ;;  %p2878_p10 = scmp.lt.s32.totalorder %s3498_s27, 2 }
   0xe   : > { %p3598_p11 = por %p193_p7, %p37_p0  ;;  %s237_s15 = sand.u32 1, %s3494_s26  }
   0xf   : > { %p3602_p12 = por %p199_p8, %p43_p3  ;;  %s2817_s16 = sshll.u32 %s3498_s27, 8 }
  0x10   : > { %s2659_s17 = sshll.u32 %s237_s15, 8  ;;  %s247_s20 = scalar_lea.hbm %s5178_s0, %s2817_s16 }
  0x11   : > { %s248_s21 = sshll.u32 %s247_s20, 4  ;;  %s241_s22 = scalar_lea.vmem [#allocation2], %s2659_s17  ;;  %s249_s21 = int_to_ptr.hbm [resolvable:$true] %s248_s21 }
  0x12   : > { %s250_s23 = sshll.u32 %s241_s22, 4  ;;  %p3613_p13 = pnand %p2878_p10, %p3587_p5  ;;  %s251_s23 = int_to_ptr.vmem [resolvable:$true] %s250_s23 }
  0x13   : > { %p2663_p0 = scmp.ge.s32.totalorder %s3498_s27, 1  ;;  %p258_p1 = scmp.lt.s32.totalorder %s3498_s27, 3 }
  0x14   : > { %s238_s8 = scalar_lea.sflag [#allocation3], %s237_s15  ;;  %s3402_s9 = sshra.s32 %s249_s21, 4  ;;  %s3403_s9 = int_to_ptr.hbm [resolvable:$true] %s3402_s9 }
  0x15   : > { %s3404_s10 = scalar_lea.hbm %s3403_s9, 256  ;;  %p3406_p3 = pneg %p3613_p13 }
  0x16   : > { %p3405_p2 = scmp.ne.s32.totalorder %s3403_s9, %s3404_s10  ;;  %s3409_s11 = scalar_lea.hbm %s5178_s0, 512 }
  0x17   : > { %p3410_p5 = scmp.lt.s32.totalorder %s3403_s9, %s5178_s0  ;;  %p3411_p8 = scmp.lt.s32.totalorder %s3409_s11, %s3404_s10 }
  0x18   : > { %p3407_p4 = pnand %p3406_p3, %p3405_p2 }
  0x19   : > { %p3412_p10 = por %p3411_p8, %p3410_p5 }
  0x1a   : > { %p3408_p7 = pneg %p3407_p4 }
  0x1c   : > { %p3413_p9 = pnand %p3412_p10, %p3408_p7 }
  0x1e   : > { %3416 = shalt.err (!%p3413_p9)
}
  0x1f   : > { %s3500_s15 = smov 128   ;;  %s3501_s20 = smov 8  }
  0x20   : > { %2873 = dma.hbm_to_vmem [thread:$0]  (!%p3613_p13), %s249_s21, 4096, %s251_s23, %s238_s8, %s3500_s15, %s3500_s15, %s3501_s20  }
  0x21   : > { %p259_p2 = pnand %p2663_p0, %p258_p1 }
  0x23   : > { %262 = sbr.rel (%p259_p2) target bundleno = 895 (0x37f), region = 48 }
  0x28   : > { %s3634_s22 = sand.u32 1, %s3490_s25  }
  0x29   : > { %s2664_s10 = sshll.u32 %s3634_s22, 8  ;;  %s265_s9 = scalar_lea.sflag [#allocation3], %s3634_s22 }
  0x2a   : > { %s3640_s16 = scalar_lea.vmem [#allocation2], %s2664_s10 }
  0x2b   : > { %3477 = dma.done.wait (%p3591_p6), %s265_s9, 4096  }
  0x2c   : > { %3479 = vsyncadd (%p3591_p6), %s265_s9, 4294963200  ;;  %v2825_v0 = vld [vmem:[%s5179_s1 + $0x38] sm:$0xff]  ;;  %v2824_v1 = vld [vmem:[%s5179_s1 + $0x30] sm:$0xff]  ;;  %vm636_vm0 = vcmask 1040384   ;;  %vm932_vm1 = vcmask 1045504   ;;  %v3502_v53 = vmov 0.0  }
  0x2d   : > { %419 = vmatpush.bf16.msra.mxu0 %v2825_v0  ;;  %2848 = vmatpush.bf16.msra.mxu1 %v2825_v0  ;;  %v2823_v2 = vld [vmem:[%s5179_s1 + $0x28] sm:$0xff]  ;;  %v2822_v3 = vld [vmem:[%s5179_s1 + $0x20] sm:$0xff]  ;;  %v2821_v4 = vld [vmem:[%s5179_s1 + $0x18] sm:$0xff]  ;;  %v3712_v54 = vrot.slane %v3502_v53, 2  ;;  %s3503_s20 = smov 64   ;;  %s3504_s9 = smov 96  }
  0x2e   : > { %2849 = vmatpush.bf16.msra.mxu2 %v2825_v0  ;;  %v2820_v5 = vld [vmem:[%s5179_s1 + $0x10] sm:$0xff]  ;;  %v2819_v6 = vld [vmem:[%s5179_s1 + $0x8] sm:$0xff]  ;;  %v2818_v7 = vld [vmem:[%s5179_s1] sm:$0xff]  ;;  %s3505_s21 = smov 32   ;;  %vm758_vm2 = vcmask 1046528   ;;  %vm1565_vm3 = vcmask 261120  }
  0x2f   : > { %v303_v8 = vld [vmem:[%s3640_s16] sm:$0xff]  ;;  %v304_v9 = vld [vmem:[%s3640_s16 + $0x8] sm:$0xff]  ;;  %v305_v11 = vld [vmem:[%s3640_s16 + $0x10] sm:$0xff]  ;;  %vm1595_vm4 = vcmask 523264   ;;  %vm1625_vm5 = vcmask 785408   ;;  %s5016_s17 = scalar_lea.vmem [#allocation5], %s2664_s10 }
  0x30   : > { %v335_v10 = vpack.c.bf16 %v304_v9, %v303_v8  ;;  %v306_v12 = vld [vmem:[%s3640_s16 + $0x18] sm:$0xff]  ;;  %v307_v14 = vld [vmem:[%s3640_s16 + $0x20] sm:$0xff]  ;;  %v308_v15 = vld [vmem:[%s3640_s16 + $0x28] sm:$0xff]  ;;  %s2847_s12 = sshll.u32 %s3569_s28, 8  ;;  %s2580_s23 = sshll.u32 %s5016_s17, 4  ;;  %s2581_s23 = int_to_ptr.vmem [resolvable:$true] %s2580_s23 }
  0x31   : > { %420 = vmatpush.bf16.msra.mxu0 %v2824_v1  ;;  %2850 = vmatpush.bf16.msra.mxu1 %v2824_v1  ;;  %v336_v13 = vpack.c.bf16 %v306_v12, %v305_v11  ;;  %v337_v16 = vpack.c.bf16 %v308_v15, %v307_v14  ;;  %v309_v17 = vld [vmem:[%s3640_s16 + $0x30] sm:$0xff]  ;;  %v310_v18 = vld [vmem:[%s3640_s16 + $0x38] sm:$0xff]  ;;  %v311_v20 = vld [vmem:[%s3640_s16 + $0x40] sm:$0xff]  ;;  %s2579_s15 = scalar_lea.hbm %s5185_s7, %s2847_s12  ;;  %s3452_s10 = scalar_lea.hbm %s5185_s7, 512 }
  0x32   : > { %2851 = vmatpush.bf16.msra.mxu2 %v2824_v1  ;;  %v338_v19 = vpack.c.bf16 %v310_v18, %v309_v17  ;;  %v312_v21 = vld [vmem:[%s3640_s16 + $0x48] sm:$0xff]  ;;  %v313_v23 = vld [vmem:[%s3640_s16 + $0x50] sm:$0xff]  ;;  %v314_v24 = vld [vmem:[%s3640_s16 + $0x58] sm:$0xff]  ;;  %s2582_s29 = sshll.u32 %s2579_s15, 4  ;;  %s2583_s29 = int_to_ptr.hbm [resolvable:$true] %s2582_s29 }
  0x33   : > { %v339_v22 = vpack.c.bf16 %v312_v21, %v311_v20  ;;  %v340_v25 = vpack.c.bf16 %v314_v24, %v313_v23  ;;  %v315_v26 = vld [vmem:[%s3640_s16 + $0x60] sm:$0xff]  ;;  %v316_v27 = vld [vmem:[%s3640_s16 + $0x68] sm:$0xff]  ;;  %v317_v33 = vld [vmem:[%s3640_s16 + $0x70] sm:$0xff]  ;;  %s3446_s28 = sshra.s32 %s2583_s29, 4  ;;  %s3447_s28 = int_to_ptr.hbm [resolvable:$true] %s3446_s28 }
  0x34   : > { %v341_v28 = vpack.c.bf16 %v316_v27, %v315_v26  ;;  %v323_v29 = vld [vmem:[%s3640_s16 + $0xa0] sm:$0xff]  ;;  %v324_v30 = vld [vmem:[%s3640_s16 + $0xa8] sm:$0xff]  ;;  %v318_v34 = vld [vmem:[%s3640_s16 + $0x78] sm:$0xff]  ;;  %p3453_p0 = scmp.lt.s32.totalorder %s3447_s28, %s5185_s7 }
  0x35   : > { %421 = vmatpush.bf16.msra.mxu0 %v2823_v2  ;;  %2852 = vmatpush.bf16.msra.mxu1 %v2823_v2  ;;  %v2843_v31 = vld [vmem:[%s5181_s3 + $0x88] sm:$0xff]  ;;  %v345_v32 = vpack.c.bf16 %v324_v30, %v323_v29  ;;  %v342_v35 = vpack.c.bf16 %v318_v34, %v317_v33  ;;  %v325_v36 = vld [vmem:[%s3640_s16 + $0xb0] sm:$0xff]  ;;  %v326_v37 = vld [vmem:[%s3640_s16 + $0xb8] sm:$0xff] }
  0x36   : > { %2853 = vmatpush.bf16.msra.mxu2 %v2823_v2  ;;  %2864 = vmatpush.bf16.msra.mxu3 %v2843_v31  ;;  %v346_v38 = vpack.c.bf16 %v326_v37, %v325_v36  ;;  %v319_v39 = vld [vmem:[%s3640_s16 + $0x80] sm:$0xff]  ;;  %v320_v40 = vld [vmem:[%s3640_s16 + $0x88] sm:$0xff]  ;;  %v321_v62 = vld [vmem:[%s3640_s16 + $0x90] sm:$0xff]  ;;  %v3767_v37 = vrot.slane %v3502_v53, 1 }
  0x37   : > { %v3698_v41 = vld [vmem:[%s5180_s2] ss:$0 sm:$0xff]  ;;  %v343_v42 = vpack.c.bf16 %v320_v40, %v319_v39  ;;  %v328_v46 = vld [vmem:[%s3640_s16 + $0xc8] sm:$0xff]  ;;  %v322_v63 = vld [vmem:[%s3640_s16 + $0x98] sm:$0xff] }
  0x38   : > { %v2842_v43 = vld [vmem:[%s5181_s3 + $0x80] sm:$0xff]  ;;  %v330_v8 = vld [vmem:[%s3640_s16 + $0xd8] sm:$0xff] }
  0x39   : > { %422 = vmatpush.bf16.msra.mxu0 %v2822_v3  ;;  %2854 = vmatpush.bf16.msra.mxu1 %v2822_v3  ;;  %v327_v45 = vld [vmem:[%s3640_s16 + $0xc0] sm:$0xff] }
  0x3a   : > { %2855 = vmatpush.bf16.msra.mxu2 %v2822_v3  ;;  %v347_v48 = vpack.c.bf16 %v328_v46, %v327_v45  ;;  %2865 = vmatpush.bf16.msra.mxu3 %v2842_v43  ;;  %v344_v3 = vpack.c.bf16 %v322_v63, %v321_v62 }
  0x3d   : > { %423 = vmatpush.bf16.msra.mxu0 %v2821_v4  ;;  %2856 = vmatpush.bf16.msra.mxu1 %v2821_v4 }
  0x3e   : > { %2857 = vmatpush.bf16.msra.mxu2 %v2821_v4 }
  0x41   : > { %424 = vmatpush.bf16.msra.mxu0 %v2820_v5  ;;  %2858 = vmatpush.bf16.msra.mxu1 %v2820_v5 }
  0x42   : > { %2859 = vmatpush.bf16.msra.mxu2 %v2820_v5 }
  0x45   : > { %425 = vmatpush.bf16.msra.mxu0 %v2819_v6  ;;  %2860 = vmatpush.bf16.msra.mxu1 %v2819_v6 }
  0x46   : > { %2861 = vmatpush.bf16.msra.mxu2 %v2819_v6 }
  0x49   : > { %426 = vmatpush.bf16.msra.mxu0 %v2818_v7  ;;  %2862 = vmatpush.bf16.msra.mxu1 %v2818_v7 }
  0x4a   : > { %2863 = vmatpush.bf16.msra.mxu2 %v2818_v7  ;;  %v329_v7 = vld [vmem:[%s3640_s16 + $0xd0] sm:$0xff] }
  0x4c   : > { %427 = vmatmul.bf16.vlgmr.msra.gmra.mxu0 %v335_v10  ;;  %477 = vmatmul.bf16.vlgmr.msra.gmra.mxu1 %v345_v32  ;;  %v348_v10 = vpack.c.bf16 %v330_v8, %v329_v7 }
  0x4d   : > { %2182 = vmatpush.bf16.msrb.mxu0 %v2843_v31  ;;  %487 = vmatmul.bf16.vlgmr.msra.gmra.mxu2 %v347_v48 }
  0x51   : > { %2183 = vmatpush.bf16.msrb.mxu0 %v2842_v43  ;;  %v331_v43 = vld [vmem:[%s3640_s16 + $0xe0] sm:$0xff] }
  0x5c   : > { %432 = vmatmul.bf16.gmra.mxu0 %v336_v13  ;;  %482 = vmatmul.bf16.gmra.mxu1 %v346_v38 }
  0x5d   : > { %492 = vmatmul.bf16.gmra.mxu2 %v348_v10 }
  0x6c   : > { %437 = vmatmul.bf16.gmra.mxu0 %v337_v16 }
  0x7c   : > { %442 = vmatmul.bf16.gmra.mxu0 %v338_v19 }
  0x8c   : > { %447 = vmatmul.bf16.gmra.mxu0 %v339_v22 }
  0x9c   : > { %452 = vmatmul.bf16.gmra.mxu0 %v340_v25 }
  0xac   : > { %457 = vmatmul.bf16.gmra.mxu0 %v341_v28 }
  0xbc   : > { %462 = vmatmul.bf16.gmra.mxu0 %v342_v35 }
  0xc9   : > { %v428_v44 = vpop.f32.mrf.mxu0 }
  0xca   : > { %v429_v47 = vadd.f32 %v3698_v41, %v428_v44  ;;  %v332_v44 = vld [vmem:[%s3640_s16 + $0xe8] sm:$0xff] }
  0xcc   : > { %v508_v49 = vmax.f32 %v429_v47, 0.0  ;;  %467 = vmatmul.bf16.gmra.mxu0 %v343_v42  ;;  %v349_v47 = vpack.c.bf16 %v332_v44, %v331_v43 }
  0xce   : > { %v572_v50 = vrot.slane %v508_v49, 7  ;;  %497 = vmatmul.bf16.gmra.mxu2 %v349_v47 }
  0xd0   : > { %v3707_v51 = vsel %vm636_vm0, 0.0, %v572_v50  ;;  %v3710_v52 = vsel %vm636_vm0, %v572_v50, 0.0 }
  0xd1   : > { %v936_v55 = vrot.slane %v3710_v52, 2  ;;  %v430_v56 = vpop.f32.mrf.mxu0  ;;  %v935_v57 = vrot.slane %v3707_v51, 2  ;;  %v761_v31 = vrot.slane %v3707_v51, 1  ;;  %v762_v32 = vrot.slane %v3710_v52, 1 }
  0xd2   : > { %v431_v58 = vadd.f32 %v3698_v41, %v430_v56 }
  0xd3   : > { %v937_v59 = vsel %vm932_vm1, %v935_v57, %v936_v55  ;;  %v3771_v42 = vsel %vm758_vm2, %v761_v31, %v762_v32 }
  0xd4   : > { %v509_v60 = vmax.f32 %v431_v58, 0.0  ;;  %v2940_v61 = vpack.i.bf16 %v937_v59, %v3712_v54  ;;  %v2935_v52 = vpack.i.bf16 %v3771_v42, %v3767_v37 }
  0xd6   : > { %v573_v0 = vrot.slane %v509_v60, 7  ;;  %2941 = vrot.lane.b32.xlu2 %v2940_v61, %s3503_s20 }
  0xd8   : > { %v3723_v1 = vsel %vm636_vm0, 0.0, %v573_v0  ;;  %v670_v2 = vsel %vm636_vm0, %v573_v0, 0.0 }
  0xd9   : > { %v939_v4 = vrot.slane %v670_v2, 2  ;;  %v433_v5 = vpop.f32.mrf.mxu0  ;;  %v938_v6 = vrot.slane %v3723_v1, 2  ;;  %v2945_v13 = vpack.i.bf16 %v3723_v1, %v3707_v51  ;;  %v765_v16 = vrot.slane %v670_v2, 1 }
  0xda   : > { %v434_v9 = vadd.f32 %v3698_v41, %v433_v5  ;;  %v764_v17 = vrot.slane %v3723_v1, 1 }
  0xdb   : > { %v3731_v11 = vsel %vm932_vm1, %v938_v6, %v939_v4 }
  0xdc   : > { %v510_v12 = vmax.f32 %v434_v9, 0.0  ;;  %472 = vmatmul.bf16.gmra.mxu0 %v344_v3  ;;  %v2920_v14 = vpack.i.bf16 %v3731_v11, %v937_v59  ;;  %v3747_v26 = vsel %vm758_vm2, %v764_v17, %v765_v16  ;;  %v334_v16 = vld [vmem:[%s3640_s16 + $0xf8] sm:$0xff] }
  0xde   : > { %v574_v15 = vrot.slane %v510_v12, 7  ;;  %2946 = vrot.lane.b32.xlu2 %v2945_v13, %s3504_s9  ;;  %2921 = vrot.lane.b32.xlu0 %v2920_v14, %s3505_s21 }
  0xe0   : > { %v3740_v18 = vsel %vm636_vm0, 0.0, %v574_v15  ;;  %v671_v19 = vsel %vm636_vm0, %v574_v15, 0.0  ;;  %v333_v15 = vld [vmem:[%s3640_s16 + $0xf0] sm:$0xff] }
  0xe1   : > { %v768_v20 = vrot.slane %v671_v19, 1  ;;  %v435_v21 = vpop.f32.mrf.mxu0  ;;  %v767_v22 = vrot.slane %v3740_v18, 1  ;;  %v941_v24 = vrot.slane %v3740_v18, 2  ;;  %v942_v25 = vrot.slane %v671_v19, 2 }
  0xe2   : > { %v436_v23 = vadd.f32 %v3698_v41, %v435_v21  ;;  %v2925_v30 = vpack.i.bf16 %v3740_v18, %v3723_v1 }
  0xe3   : > { %v3750_v27 = vsel %vm758_vm2, %v767_v22, %v768_v20  ;;  %v3761_v34 = vsel %vm932_vm1, %v941_v24, %v942_v25  ;;  %v350_v20 = vpack.c.bf16 %v334_v16, %v333_v15 }
  0xe4   : > { %v511_v28 = vmax.f32 %v436_v23, 0.0  ;;  %v2930_v29 = vpack.i.bf16 %v3750_v27, %v3747_v26  ;;  %v1756_v45 = vpack.c.bf16 %v3761_v34, %v3731_v11  ;;  %v2965_v25 = vpack.i.bf16 %v3761_v34, %v3731_v11 }
  0xe5   : > { %502 = vmatmul.bf16.gmra.mxu2 %v350_v20 }
  0xe6   : > { %v575_v33 = vrot.slane %v511_v28, 7  ;;  %2931 = vrot.lane.b32.xlu1 %v2930_v29, %s3504_s9  ;;  %2926 = vrot.lane.b32.xlu0 %v2925_v30, %s3503_s20 }
  0xe8   : > { %v3764_v35 = vsel %vm636_vm0, 0.0, %v575_v33  ;;  %v672_v36 = vsel %vm636_vm0, %v575_v33, 0.0 }
  0xe9   : > { %v945_v38 = vrot.slane %v672_v36, 2  ;;  %v438_v39 = vpop.f32.mrf.mxu0  ;;  %v944_v40 = vrot.slane %v3764_v35, 2  ;;  %v771_v55 = vrot.slane %v672_v36, 1  ;;  %v770_v56 = vrot.slane %v3764_v35, 1 }
  0xea   : > { %v439_v46 = vadd.f32 %v3698_v41, %v438_v39  ;;  %v2975_v23 = vpack.i.bf16 %v3764_v35, %v3740_v18 }
  0xeb   : > { %v3779_v48 = vsel %vm932_vm1, %v944_v40, %v945_v38  ;;  %v3797_v2 = vsel %vm758_vm2, %v770_v56, %v771_v55 }
  0xec   : > { %v512_v49 = vmax.f32 %v439_v46, 0.0  ;;  %2770 = vmatmul.msk.bf16.vlgmr.msrb.gmra.mxu0 %vm1565_vm3, %v1756_v45  ;;  %v2950_v50 = vpack.i.bf16 %v3779_v48, %v3761_v34 }
  0xee   : > { %v576_v53 = vrot.slane %v512_v49, 7  ;;  %2951 = vrot.lane.b32.xlu0 %v2950_v50, %s3505_s21  ;;  %2936 = vrot.lane.b32.xlu1 %v2935_v52, %s3505_s21 }
  0xf0   : > { %v3790_v57 = vsel %vm636_vm0, 0.0, %v576_v53  ;;  %v673_v58 = vsel %vm636_vm0, %v576_v53, 0.0 }
  0xf1   : > { %v773_v59 = vrot.slane %v3790_v57, 1  ;;  %v774_v60 = vrot.slane %v673_v58, 1  ;;  %v440_v61 = vpop.f32.mrf.mxu0  ;;  %v947_v63 = vrot.slane %v3790_v57, 2  ;;  %v948_v0 = vrot.slane %v673_v58, 2  ;;  %v2841_v58 = vld [vmem:[%s5181_s3 + $0x78] sm:$0xff] }
  0xf2   : > { %v441_v62 = vadd.f32 %v3698_v41, %v440_v61  ;;  %v2960_v6 = vpack.i.bf16 %v3790_v57, %v3764_v35  ;;  %2087 = vmatpush.bf16.msrb.mxu2 %v2841_v58 }
  0xf3   : > { %v3800_v3 = vsel %vm758_vm2, %v773_v59, %v774_v60  ;;  %v949_v8 = vsel %vm932_vm1, %v947_v63, %v948_v0 }
  0xf4   : > { %v513_v4 = vmax.f32 %v441_v62, 0.0  ;;  %v2970_v5 = vpack.i.bf16 %v3800_v3, %v3797_v2  ;;  %v1759_v19 = vpack.c.bf16 %v949_v8, %v3779_v48 }
  0xf6   : > { %v577_v7 = vrot.slane %v513_v4, 7  ;;  %2971 = vrot.lane.b32.xlu2 %v2970_v5, %s3504_s9  ;;  %2956 = vrot.lane.b32.xlu0 %v2930_v29, %s3505_s21 }
  0xf7   : > { %2961 = vrot.lane.b32.xlu1 %v2960_v6, %s3503_s20  ;;  %v2995_v6 = vpack.i.bf16 %v949_v8, %v3779_v48 }
  0xf8   : > { %v3811_v9 = vsel %vm636_vm0, 0.0, %v577_v7  ;;  %v674_v10 = vsel %vm636_vm0, %v577_v7, 0.0 }
  0xf9   : > { %v951_v12 = vrot.slane %v674_v10, 2  ;;  %v443_v13 = vpop.f32.mrf.mxu0  ;;  %v950_v14 = vrot.slane %v3811_v9, 2  ;;  %v777_v29 = vrot.slane %v674_v10, 1  ;;  %v776_v30 = vrot.slane %v3811_v9, 1 }
  0xfa   : > { %v444_v17 = vadd.f32 %v3698_v41, %v443_v13  ;;  %v3005_v63 = vpack.i.bf16 %v3811_v9, %v3790_v57  ;;  %v2840_v13 = vld [vmem:[%s5181_s3 + $0x70] sm:$0xff] }
  0xfb   : > { %v3820_v21 = vsel %vm932_vm1, %v950_v14, %v951_v12  ;;  %v3840_v40 = vsel %vm758_vm2, %v776_v30, %v777_v29  ;;  %2088 = vmatpush.bf16.msrb.mxu2 %v2840_v13  ;;  %v2839_v29 = vld [vmem:[%s5181_s3 + $0x68] sm:$0xff] }
  0xfc   : > { %v514_v22 = vmax.f32 %v444_v17, 0.0  ;;  %2771 = vmatmul.msk.bf16.gmra.mxu0 %vm1565_vm3, %v1759_v19  ;;  %v2980_v24 = vpack.i.bf16 %v3820_v21, %v949_v8 }
  0xfe   : > { %v578_v28 = vrot.slane %v514_v22, 7  ;;  %2976 = vrot.lane.b32.xlu2 %v2975_v23, %s3504_s9  ;;  %2981 = vrot.lane.b32.xlu0 %v2980_v24, %s3505_s21 }
  0xff   : > { %2966 = vrot.lane.b32.xlu1 %v2965_v25, %s3503_s20  ;;  %2089 = vmatpush.bf16.msrb.mxu2 %v2839_v29  ;;  %v2832_v29 = vld [vmem:[%s5181_s3 + $0x30] sm:$0xff] }
 0x100   : > { %v3833_v31 = vsel %vm636_vm0, 0.0, %v578_v28  ;;  %v675_v32 = vsel %vm636_vm0, %v578_v28, 0.0 }
 0x101   : > { %v779_v33 = vrot.slane %v3833_v31, 1  ;;  %v780_v36 = vrot.slane %v675_v32, 1  ;;  %v445_v38 = vpop.f32.mrf.mxu0  ;;  %v953_v34 = vrot.slane %v3833_v31, 2  ;;  %v954_v39 = vrot.slane %v675_v32, 2 }
 0x102   : > { %v446_v11 = vadd.f32 %v3698_v41, %v445_v38  ;;  %v2990_v46 = vpack.i.bf16 %v3833_v31, %v3811_v9 }
 0x103   : > { %v3843_v43 = vsel %vm758_vm2, %v779_v33, %v780_v36  ;;  %v955_v49 = vsel %vm932_vm1, %v953_v34, %v954_v39 }
 0x104   : > { %v515_v44 = vmax.f32 %v446_v11, 0.0  ;;  %v3000_v45 = vpack.i.bf16 %v3843_v43, %v3840_v40  ;;  %v1762_v60 = vpack.c.bf16 %v955_v49, %v3820_v21  ;;  %v3025_v39 = vpack.i.bf16 %v955_v49, %v3820_v21 }
 0x106   : > { %v579_v47 = vrot.slane %v515_v44, 7  ;;  %3001 = vrot.lane.b32.xlu2 %v3000_v45, %s3504_s9  ;;  %2986 = vrot.lane.b32.xlu0 %v2970_v5, %s3505_s21 }
 0x107   : > { %2991 = vrot.lane.b32.xlu1 %v2990_v46, %s3503_s20 }
 0x108   : > { %v644_v50 = vsel %vm636_vm0, 0.0, %v579_v47  ;;  %v676_v52 = vsel %vm636_vm0, %v579_v47, 0.0 }
 0x109   : > { %v1254_v53 = vrot.slane %v644_v50, 2  ;;  %v1255_v55 = vrot.slane %v676_v52, 2  ;;  %v448_v56 = vpop.f32.mrf.mxu0  ;;  %v1210_v4 = vrot.slane %v644_v50, 1  ;;  %v1211_v5 = vrot.slane %v676_v52, 1 }
 0x10a   : > { %v449_v59 = vadd.f32 %v3698_v41, %v448_v56  ;;  %v3010_v17 = vpack.i.bf16 0.0, %v644_v50  ;;  %v3035_v11 = vpack.i.bf16 %v644_v50, %v3833_v31 }
 0x10b   : > { %v1256_v61 = vsel %vm932_vm1, %v1254_v53, %v1255_v55  ;;  %v3869_v12 = vsel %vm758_vm2, %v1210_v4, %v1211_v5 }
 0x10c   : > { %v516_v62 = vmax.f32 %v449_v59, 0.0  ;;  %2772 = vmatmul.msk.bf16.gmra.mxu0 %vm1565_vm3, %v1762_v60  ;;  %v3015_v0 = vpack.i.bf16 %v1256_v61, %v955_v49  ;;  %v3030_v16 = vpack.i.bf16 %v3767_v37, %v3869_v12  ;;  %v1765_v30 = vpack.c.bf16 %v3712_v54, %v1256_v61  ;;  %v2838_v59 = vld [vmem:[%s5181_s3 + $0x60] sm:$0xff] }
 0x10d   : > { %2090 = vmatpush.bf16.msrb.mxu2 %v2838_v59 }
 0x10e   : > { %3006 = vrot.lane.b32.xlu2 %v3005_v63, %s3504_s9  ;;  %3016 = vrot.lane.b32.xlu0 %v3015_v0, %s3505_s21  ;;  %v580_v7 = vrot.slane %v516_v62, 7 }
 0x10f   : > { %2996 = vrot.lane.b32.xlu1 %v2995_v6, %s3503_s20 }
 0x110   : > { %v3876_v48 = vsel %vm636_vm0, 0.0, %v580_v7  ;;  %v677_v8 = vsel %vm636_vm0, %v580_v7, 0.0 }
 0x111   : > { %v450_v10 = vpop.f32.mrf.mxu0  ;;  %v956_v20 = vrot.slane %v3876_v48, 2  ;;  %v957_v22 = vrot.slane %v677_v8, 2  ;;  %v783_v46 = vrot.slane %v677_v8, 1  ;;  %v2833_v8 = vld [vmem:[%s5181_s3 + $0x38] sm:$0xff] }
 0x112   : > { %v451_v14 = vadd.f32 %v3698_v41, %v450_v10  ;;  %1998 = vmatpush.bf16.msrb.mxu1 %v2833_v8 }
 0x113   : > { %v958_v33 = vsel %vm932_vm1, %v956_v20, %v957_v22 }
 0x114   : > { %v517_v15 = vmax.f32 %v451_v14, 0.0 }
 0x116   : > { %v581_v19 = vrot.slane %v517_v15, 7  ;;  %3031 = vrot.lane.b32.xlu2 %v3030_v16, %s3504_s9  ;;  %3021 = vrot.lane.b32.xlu0 %v3000_v45, %s3505_s21  ;;  %v782_v45 = vrot.slane %v3876_v48, 1 }
 0x117   : > { %3011 = vrot.lane.b32.xlu1 %v3010_v17, %s3503_s20  ;;  %1999 = vmatpush.bf16.msrb.mxu1 %v2832_v29  ;;  %v2834_v29 = vld [vmem:[%s5181_s3 + $0x40] sm:$0xff] }
 0x118   : > { %v3886_v23 = vsel %vm636_vm0, 0.0, %v581_v19  ;;  %v678_v24 = vsel %vm636_vm0, %v581_v19, 0.0  ;;  %v3925_v63 = vsel %vm758_vm2, %v782_v45, %v783_v46  ;;  %v2837_v19 = vld [vmem:[%s5181_s3 + $0x58] sm:$0xff] }
 0x119   : > { %5209 = vst [vmem:[#allocation9_spill] sm:$0xff] %v3886_v23  ;;  %v960_v25 = vrot.slane %v678_v24, 2  ;;  %v453_v28 = vpop.f32.mrf.mxu0  ;;  %v959_v37 = vrot.slane %v3886_v23, 2  ;;  %v786_v47 = vrot.slane %v678_v24, 1  ;;  %v785_v52 = vrot.slane %v3886_v23, 1  ;;  %2091 = vmatpush.bf16.msrb.mxu2 %v2837_v19 }
 0x11a   : > { %v454_v32 = vadd.f32 %v3698_v41, %v453_v28  ;;  %v3055_v28 = vpack.i.bf16 %v3886_v23, %v3876_v48 }
 0x11b   : > { %v3897_v36 = vsel %vm932_vm1, %v959_v37, %v960_v25  ;;  %v3919_v61 = vsel %vm758_vm2, %v785_v52, %v786_v47  ;;  %v2836_v52 = vld [vmem:[%s5181_s3 + $0x50] sm:$0xff] }
 0x11c   : > { %v518_v38 = vmax.f32 %v454_v32, 0.0  ;;  %2773 = vmatmul.msk.bf16.gmra.mxu0 %vm1565_vm3, %v1765_v30  ;;  %v3040_v34 = vpack.i.bf16 %v3897_v36, %v958_v33 }
 0x11d   : > { %2092 = vmatpush.bf16.msrb.mxu2 %v2836_v52 }
 0x11e   : > { %v582_v44 = vrot.slane %v518_v38, 7  ;;  %3036 = vrot.lane.b32.xlu2 %v3035_v11, %s3504_s9  ;;  %3041 = vrot.lane.b32.xlu0 %v3040_v34, %s3505_s21 }
 0x11f   : > { %3026 = vrot.lane.b32.xlu1 %v3025_v39, %s3503_s20 }
 0x120   : > { %v3909_v53 = vsel %vm636_vm0, 0.0, %v582_v44  ;;  %v679_v50 = vsel %vm636_vm0, %v582_v44, 0.0 }
 0x121   : > { %5210 = vst [vmem:[#allocation10_spill] sm:$0xff] %v3909_v53  ;;  %v788_v21 = vrot.slane %v3909_v53, 1  ;;  %v789_v49 = vrot.slane %v679_v50, 1  ;;  %v962_v55 = vrot.slane %v3909_v53, 2  ;;  %v963_v56 = vrot.slane %v679_v50, 2  ;;  %v455_v58 = vpop.f32.mrf.mxu0  ;;  %v3978_v50 = vpop.f32.mrf.mxu1 }
 0x122   : > { %v456_v60 = vadd.f32 %v3698_v41, %v455_v58  ;;  %v3045_v7 = vpack.i.bf16 %v3909_v53, %v3886_v23 }
 0x123   : > { %v3922_v62 = vsel %vm758_vm2, %v788_v21, %v789_v49  ;;  %v3928_v0 = vsel %vm932_vm1, %v962_v55, %v963_v56  ;;  %v2831_v21 = vld [vmem:[%s5181_s3 + $0x28] sm:$0xff] }
 0x124   : > { %v519_v4 = vmax.f32 %v456_v60, 0.0  ;;  %v3050_v5 = vpack.i.bf16 %v3922_v62, %v3919_v61  ;;  %v3060_v6 = vpack.i.bf16 %v3928_v0, %v3925_v63  ;;  %v1768_v22 = vpack.c.bf16 %v3928_v0, %v3897_v36  ;;  %2000 = vmatpush.bf16.msrb.mxu1 %v2831_v21 }
 0x126   : > { %v583_v10 = vrot.slane %v519_v4, 7  ;;  %3051 = vrot.lane.b32.xlu2 %v3050_v5, %s3504_s9  ;;  %3061 = vrot.lane.b32.xlu0 %v3060_v6, %s3505_s21  ;;  %v2830_v6 = vld [vmem:[%s5181_s3 + $0x20] sm:$0xff] }
 0x127   : > { %3046 = vrot.lane.b32.xlu1 %v3045_v7, %s3503_s20 }
 0x128   : > { %v3940_v13 = vsel %vm636_vm0, 0.0, %v583_v10  ;;  %v680_v14 = vsel %vm636_vm0, %v583_v10, 0.0  ;;  %2001 = vmatpush.bf16.msrb.mxu1 %v2830_v6 }
 0x129   : > { %5211 = vst [vmem:[#allocation11_spill] sm:$0xff] %v3940_v13  ;;  %v966_v15 = vrot.slane %v680_v14, 2  ;;  %v458_v16 = vpop.f32.mrf.mxu0  ;;  %v965_v17 = vrot.slane %v3940_v13, 2  ;;  %v3065_v30 = vpack.i.bf16 %v3940_v13, %v958_v33  ;;  %v792_v38 = vrot.slane %v680_v14, 1 }
 0x12a   : > { %v459_v20 = vadd.f32 %v3698_v41, %v458_v16  ;;  %v791_v11 = vrot.slane %v3940_v13, 1  ;;  %v2829_v16 = vld [vmem:[%s5181_s3 + $0x18] sm:$0xff] }
 0x12b   : > { %v3954_v24 = vsel %vm932_vm1, %v965_v17, %v966_v15 }
 0x12c   : > { %v520_v25 = vmax.f32 %v459_v20, 0.0  ;;  %2774 = vmatmul.msk.bf16.gmra.mxu0 %vm1565_vm3, %v1768_v22  ;;  %v3070_v37 = vpack.i.bf16 %v3919_v61, %v3954_v24  ;;  %v3985_v55 = vsel %vm758_vm2, %v791_v11, %v792_v38  ;;  %v480_v22 = vpop.f32.mrf.mxu1  ;;  %2002 = vmatpush.bf16.msrb.mxu1 %v2829_v16  ;;  %v2828_v38 = vld [vmem:[%s5181_s3 + $0x10] sm:$0xff] }
 0x12e   : > { %v584_v32 = vrot.slane %v520_v25, 7  ;;  %3056 = vrot.lane.b32.xlu2 %v3055_v28, %s3504_s9  ;;  %3071 = vrot.lane.b32.xlu0 %v3070_v37, %s3505_s21  ;;  %v3085_v28 = vpack.i.bf16 %v3940_v13, %v3909_v53 }
 0x12f   : > { %3066 = vrot.lane.b32.xlu1 %v3065_v30, %s3503_s20 }
 0x130   : > { %v3970_v34 = vsel %vm636_vm0, 0.0, %v584_v32  ;;  %v681_v39 = vsel %vm636_vm0, %v584_v32, 0.0  ;;  %v4035_v11 = vpop.permute.xlu2 %2941  ;;  %2003 = vmatpush.bf16.msrb.mxu1 %v2828_v38 }
 0x131   : > { %5212 = vst [vmem:[#allocation12_spill] sm:$0xff] %v3970_v34  ;;  %v794_v44 = vrot.slane %v3970_v34, 1  ;;  %v795_v45 = vrot.slane %v681_v39, 1  ;;  %v968_v33 = vrot.slane %v3970_v34, 2  ;;  %v969_v46 = vrot.slane %v681_v39, 2  ;;  %v460_v47 = vpop.f32.mrf.mxu0 }
 0x132   : > { %v461_v49 = vadd.f32 %v3698_v41, %v460_v47  ;;  %v3075_v5 = vpack.i.bf16 %v3897_v36, %v3970_v34  ;;  %v2835_v36 = vld [vmem:[%s5181_s3 + $0x48] sm:$0xff] }
 0x133   : > { %v3988_v56 = vsel %vm758_vm2, %v794_v44, %v795_v45  ;;  %v3991_v58 = vsel %vm932_vm1, %v968_v33, %v969_v46  ;;  %2093 = vmatpush.bf16.msrb.mxu2 %v2835_v36 }
 0x134   : > { %5213 = vst [vmem:[#allocation13_spill] sm:$0xff] %v3988_v56  ;;  %v521_v59 = vmax.f32 %v461_v49, 0.0  ;;  %v3080_v60 = vpack.i.bf16 %v3988_v56, %v3985_v55  ;;  %v3090_v4 = vpack.i.bf16 %v3991_v58, %v3922_v62  ;;  %v1771_v19 = vpack.c.bf16 %v3991_v58, %v3954_v24 }
 0x136   : > { %v585_v7 = vrot.slane %v521_v59, 7  ;;  %3081 = vrot.lane.b32.xlu2 %v3080_v60, %s3504_s9  ;;  %3091 = vrot.lane.b32.xlu0 %v3090_v4, %s3505_s21  ;;  %v2827_v59 = vld [vmem:[%s5181_s3 + $0x8] sm:$0xff] }
 0x137   : > { %3076 = vrot.lane.b32.xlu1 %v3075_v5, %s3503_s20  ;;  %2094 = vmatpush.bf16.msrb.mxu2 %v2834_v29 }
 0x138   : > { %v4006_v10 = vsel %vm636_vm0, 0.0, %v585_v7  ;;  %v682_v14 = vsel %vm636_vm0, %v585_v7, 0.0  ;;  %v481_v7 = vadd.f32 %v3698_v41, %v480_v22  ;;  %2004 = vmatpush.bf16.msrb.mxu1 %v2827_v59  ;;  %v2826_v22 = vld [vmem:[%s5181_s3] sm:$0xff] }
 0x139   : > { %5214 = vst [vmem:[#allocation14_spill] sm:$0xff] %v4006_v10  ;;  %v972_v8 = vrot.slane %v682_v14, 2  ;;  %v463_v15 = vpop.f32.mrf.mxu0  ;;  %v971_v20 = vrot.slane %v4006_v10, 2  ;;  %v3095_v32 = vpack.i.bf16 %v4006_v10, %v3928_v0  ;;  %v798_v44 = vrot.slane %v682_v14, 1 }
 0x13a   : > { %v464_v17 = vadd.f32 %v3698_v41, %v463_v15  ;;  %v797_v45 = vrot.slane %v4006_v10, 1  ;;  %v483_v15 = vpop.f32.mrf.mxu1 }
 0x13b   : > { %v4023_v37 = vsel %vm932_vm1, %v971_v20, %v972_v8  ;;  %v529_v20 = vmax.f32 %v481_v7, 0.0 }
 0x13c   : > { %v522_v25 = vmax.f32 %v464_v17, 0.0  ;;  %2775 = vmatmul.msk.bf16.gmra.mxu0 %vm1565_vm3, %v1771_v19  ;;  %v3100_v30 = vpack.i.bf16 %v3985_v55, %v4023_v37  ;;  %v4052_v4 = vsel %vm758_vm2, %v797_v45, %v798_v44  ;;  %v484_v17 = vadd.f32 %v3698_v41, %v483_v15  ;;  %2005 = vmatpush.bf16.msrb.mxu1 %v2826_v22 }
 0x13d   : > { %5216 = vst [vmem:[#allocation16_spill] sm:$0xff] %v4052_v4 }
 0x13e   : > { %v586_v39 = vrot.slane %v522_v25, 7  ;;  %3086 = vrot.lane.b32.xlu2 %v3085_v28, %s3504_s9  ;;  %3101 = vrot.lane.b32.xlu0 %v3100_v30, %s3505_s21  ;;  %v4074_v25 = vpop.permute.xlu2 %2946  ;;  %v530_v29 = vmax.f32 %v484_v17, 0.0 }
 0x13f   : > { %3096 = vrot.lane.b32.xlu1 %v3095_v32, %s3503_s20 }
 0x140   : > { %v4042_v33 = vsel %vm636_vm0, 0.0, %v586_v39  ;;  %v683_v0 = vsel %vm636_vm0, %v586_v39, 0.0 }
 0x141   : > { %5215 = vst [vmem:[#allocation15_spill] sm:$0xff] %v4042_v33  ;;  %v800_v46 = vrot.slane %v4042_v33, 1  ;;  %v801_v47 = vrot.slane %v683_v0, 1  ;;  %v974_v52 = vrot.slane %v4042_v33, 2  ;;  %v975_v21 = vrot.slane %v683_v0, 2  ;;  %v465_v49 = vpop.f32.mrf.mxu0 }
 0x142   : > { %v466_v60 = vadd.f32 %v3698_v41, %v465_v49  ;;  %v3105_v16 = vpack.i.bf16 %v3954_v24, %v4042_v33  ;;  %v593_v0 = vrot.slane %v529_v20, 7 }
 0x143   : > { %v4055_v5 = vsel %vm758_vm2, %v800_v46, %v801_v47  ;;  %v4058_v6 = vsel %vm932_vm1, %v974_v52, %v975_v21  ;;  %v3125_v47 = vpack.i.bf16 %v4006_v10, %v3970_v34  ;;  %v594_v21 = vrot.slane %v530_v29, 7 }
 0x144   : > { %5217 = vst [vmem:[#allocation17_spill] sm:$0xff] %v4055_v5  ;;  %v523_v14 = vmax.f32 %v466_v60, 0.0  ;;  %v3110_v36 = vpack.i.bf16 %v4055_v5, %v4052_v4  ;;  %v3115_v8 = vpack.i.bf16 %v4058_v6, %v3988_v56  ;;  %v1774_v44 = vpack.c.bf16 %v4058_v6, %v4023_v37 }
 0x146   : > { %v587_v19 = vrot.slane %v523_v14, 7  ;;  %3111 = vrot.lane.b32.xlu2 %v3110_v36, %s3504_s9  ;;  %3116 = vrot.lane.b32.xlu0 %v3115_v8, %s3505_s21  ;;  %v479_v14 = vadd.f32 %v3698_v41, %v3978_v50  ;;  %v4101_v36 = vsel %vm636_vm0, 0.0, %v593_v0  ;;  %v4104_v8 = vsel %vm636_vm0, %v593_v0, 0.0 }
 0x147   : > { %3106 = vrot.lane.b32.xlu1 %v3105_v16, %s3503_s20  ;;  %5218 = vst [vmem:[#allocation18_spill] sm:$0xff] %v4101_v36  ;;  %v4113_v50 = vsel %vm636_vm0, 0.0, %v594_v21  ;;  %v993_v29 = vrot.slane %v4104_v8, 2 }
 0x148   : > { %v4077_v28 = vsel %vm636_vm0, 0.0, %v587_v19  ;;  %v684_v24 = vsel %vm636_vm0, %v587_v19, 0.0  ;;  %v4116_v19 = vsel %vm636_vm0, %v594_v21, 0.0 }
 0x149   : > { %v1257_v30 = vrot.slane %v4077_v28, 2  ;;  %v1258_v32 = vrot.slane %v684_v24, 2  ;;  %v468_v38 = vpop.f32.mrf.mxu0  ;;  %v3120_v49 = vpack.i.bf16 %v4077_v28, %v3991_v58  ;;  %v1213_v59 = vrot.slane %v4077_v28, 1 }
 0x14a   : > { %v469_v39 = vadd.f32 %v3698_v41, %v468_v38  ;;  %v1214_v60 = vrot.slane %v684_v24, 1 }
 0x14b   : > { %v4085_v45 = vsel %vm932_vm1, %v1257_v30, %v1258_v32  ;;  %v992_v30 = vrot.slane %v4101_v36, 2  ;;  %v528_v32 = vmax.f32 %v479_v14, 0.0 }
 0x14c   : > { %v524_v46 = vmax.f32 %v469_v39, 0.0  ;;  %2776 = vmatmul.msk.bf16.gmra.mxu0 %vm1565_vm3, %v1774_v44  ;;  %v3130_v52 = vpack.i.bf16 %v4052_v4, %v4085_v45  ;;  %v4122_v38 = vsel %vm758_vm2, %v1213_v59, %v1214_v60  ;;  %v4124_v39 = vpop.f32.mrf.mxu2  ;;  %v485_v60 = vpop.f32.mrf.mxu1 }
 0x14d   : > { %5220 = vst [vmem:[#allocation20_spill] sm:$0xff] %v4122_v38  ;;  %v3135_v59 = vpack.i.bf16 %v4042_v33, %v4122_v38 }
 0x14e   : > { %v588_v7 = vrot.slane %v524_v46, 7  ;;  %3126 = vrot.lane.b32.xlu2 %v3125_v47, %s3504_s9  ;;  %3131 = vrot.lane.b32.xlu0 %v3130_v52, %s3505_s21  ;;  %v995_v46 = vrot.slane %v4113_v50, 2  ;;  %v996_v47 = vrot.slane %v4116_v19, 2 }
 0x14f   : > { %3121 = vrot.lane.b32.xlu1 %v3120_v49, %s3503_s20  ;;  %v3145_v49 = vpack.i.bf16 %v4058_v6, %v4023_v37  ;;  %v1777_v6 = vpack.c.bf16 %v3712_v54, %v4085_v45 }
 0x150   : > { %v4107_v58 = vsel %vm636_vm0, 0.0, %v588_v7  ;;  %v685_v15 = vsel %vm636_vm0, %v588_v7, 0.0  ;;  %v4110_v16 = vpop.permute.xlu2 %2971  ;;  %v2922_v17 = vpop.permute.xlu0 %2921  ;;  %v4139_v7 = vsel %vm932_vm1, %v992_v30, %v993_v29  ;;  %v4146_v37 = vsel %vm932_vm1, %v995_v46, %v996_v47 }
 0x151   : > { %5219 = vst [vmem:[#allocation19_spill] sm:$0xff] %v4107_v58  ;;  %v977_v20 = vrot.slane %v4107_v58, 2  ;;  %v978_v22 = vrot.slane %v685_v15, 2  ;;  %v470_v24 = vpop.f32.mrf.mxu0  ;;  %v803_v14 = vrot.slane %v4107_v58, 1  ;;  %v2923_v29 = vunpack.i.l.bf16 %v2922_v17 }
 0x152   : > { %v471_v44 = vadd.f32 %v3698_v41, %v470_v24  ;;  %v2924_v24 = vunpack.i.h.bf16 %v2922_v17 }
 0x153   : > { %v4128_v0 = vsel %vm932_vm1, %v977_v20, %v978_v22  ;;  %v592_v20 = vrot.slane %v528_v32, 7  ;;  %v804_v22 = vrot.slane %v685_v15, 1  ;;  %v1786_v15 = vpack.c.bf16 %v4146_v37, %v4139_v7 }
 0x154   : > { %v3140_v52 = vpack.i.bf16 %v4128_v0, %v4055_v5  ;;  %v525_v21 = vmax.f32 %v471_v44, 0.0 }
 0x155   : > { %2780 = vmatmul.msk.bf16.vlgmr.msra.gmra.mxu3 %vm1565_vm3, %v1786_v15  ;;  %v4165_v13 = vsel %vm758_vm2, %v803_v14, %v804_v22 }
 0x156   : > { %3141 = vrot.lane.b32.xlu2 %v3140_v52, %s3505_s21  ;;  %v589_v44 = vrot.slane %v525_v21, 7  ;;  %3146 = vrot.lane.b32.xlu0 %v3145_v49, %s3503_s20  ;;  %v486_v52 = vadd.f32 %v3698_v41, %v485_v60  ;;  %v1659_v60 = vsel %vm1565_vm3, %v3747_v26, %v2924_v24  ;;  %5221 = vst [vmem:[#allocation21_spill] sm:$0xff] %v4165_v13 }
 0x157   : > { %3136 = vrot.lane.b32.xlu1 %v3135_v59, %s3504_s9 }
 0x158   : > { %v2932_v30 = vpop.permute.xlu1 %2931  ;;  %v4150_v32 = vpop.permute.xlu2 %2976  ;;  %v4156_v21 = vsel %vm636_vm0, 0.0, %v589_v44  ;;  %v686_v49 = vsel %vm636_vm0, %v589_v44, 0.0  ;;  %v1658_v44 = vsel %vm1565_vm3, %v3771_v42, %v2923_v29 }
 0x159   : > { %v2934_v59 = vunpack.i.h.bf16 %v2932_v30  ;;  %v2933_v46 = vunpack.i.l.bf16 %v2932_v30  ;;  %v2927_v47 = vpop.permute.xlu0 %2926  ;;  %v473_v10 = vpop.f32.mrf.mxu0  ;;  %v806_v45 = vrot.slane %v4156_v21, 1  ;;  %v807_v17 = vrot.slane %v686_v49, 1 }
 0x15a   : > { %v980_v33 = vrot.slane %v4156_v21, 2  ;;  %v981_v5 = vrot.slane %v686_v49, 2  ;;  %v2929_v38 = vunpack.i.h.bf16 %v2927_v47  ;;  %v2928_v34 = vunpack.i.l.bf16 %v2927_v47  ;;  %v4177_v49 = vpop.f32.mrf.mxu2 }
 0x15b   : > { %v474_v30 = vadd.f32 %v3698_v41, %v473_v10  ;;  %v4175_v15 = vsel %vm758_vm2, %v806_v45, %v807_v17  ;;  %v531_v45 = vmax.f32 %v486_v52, 0.0 }
 0x15c   : > { %2777 = vmatmul.msk.bf16.gmra.mxu0 %vm1565_vm3, %v1777_v6  ;;  %v4172_v4 = vsel %vm932_vm1, %v980_v33, %v981_v5  ;;  %v1690_v26 = vsel %vm1595_vm4, %v1658_v44, %v2928_v34  ;;  %v1691_v14 = vsel %vm1595_vm4, %v1659_v60, %v2929_v38  ;;  %v3150_v42 = vpack.i.bf16 %v4175_v15, %v4077_v28 }
 0x15d   : > { %v3155_v22 = vpack.i.bf16 %v4165_v13, %v4172_v4  ;;  %v526_v10 = vmax.f32 %v474_v30, 0.0  ;;  %v1722_v24 = vsel %vm1625_vm5, %v1690_v26, %v2933_v46  ;;  %v1723_v33 = vsel %vm1625_vm5, %v1691_v14, %v2934_v59 }
 0x15e   : > { %v2944_v5 = vunpack.i.h.bf16 %v4035_v11  ;;  %v1755_v34 = vpack.c.bf16 %v1723_v33, %v1722_v24  ;;  %v2943_v38 = vunpack.i.l.bf16 %v4035_v11  ;;  %v2949_v6 = vunpack.i.h.bf16 %v4074_v25 }
 0x15f   : > { %3156 = vrot.lane.b32.xlu2 %v3155_v22, %s3505_s21  ;;  %3151 = vrot.lane.b32.xlu1 %v3150_v42, %s3504_s9  ;;  %v590_v29 = vrot.slane %v526_v10, 7  ;;  %v4195_v46 = vsel %vm636_vm0, 0.0, %v592_v20  ;;  %v4198_v59 = vsel %vm636_vm0, %v592_v20, 0.0  ;;  %v2948_v30 = vunpack.i.l.bf16 %v4074_v25 }
 0x160   : > { %v4192_v47 = vpop.permute.xlu2 %3001  ;;  %v2937_v28 = vpop.permute.xlu1 %2936  ;;  %5222 = vst [vmem:[#allocation22_spill] sm:$0xff] %v4195_v46  ;;  %2095 = vmatmul.bf16.vlgmr.msrb.gmra.mxu2 %v1755_v34  ;;  %v595_v34 = vrot.slane %v531_v45, 7 }
 0x161   : > { %v2952_v17 = vpop.permute.xlu0 %2951  ;;  %v2939_v60 = vunpack.i.h.bf16 %v2937_v28  ;;  %v2938_v44 = vunpack.i.l.bf16 %v2937_v28  ;;  %v4203_v26 = vsel %vm636_vm0, 0.0, %v590_v29  ;;  %v687_v14 = vsel %vm636_vm0, %v590_v29, 0.0  ;;  %v475_v52 = vpop.f32.mrf.mxu0 }
 0x162   : > { %v809_v22 = vrot.slane %v4203_v26, 1  ;;  %v810_v42 = vrot.slane %v687_v14, 1  ;;  %v983_v20 = vrot.slane %v4203_v26, 2  ;;  %v984_v10 = vrot.slane %v687_v14, 2 }
 0x163   : > { %v1567_v33 = vsel %vm1565_vm3, %v3707_v51, %v2939_v60  ;;  %v1566_v25 = vsel %vm1565_vm3, 0.0, %v2938_v44  ;;  %v2954_v28 = vunpack.i.h.bf16 %v2952_v17  ;;  %v476_v29 = vadd.f32 %v3698_v41, %v475_v52  ;;  %v493_v60 = vpop.f32.mrf.mxu2 }
 0x164   : > { %v4213_v11 = vsel %vm1595_vm4, %v1566_v25, %v2943_v38  ;;  %v3160_v13 = vpack.i.bf16 %v4203_v26, %v4156_v21  ;;  %v2953_v56 = vunpack.i.l.bf16 %v2952_v17  ;;  %v4219_v14 = vsel %vm758_vm2, %v809_v22, %v810_v42 }
 0x165   : > { %v1597_v24 = vsel %vm1595_vm4, %v1567_v33, %v2944_v5  ;;  %v1626_v51 = vsel %vm1625_vm5, %v4213_v11, %v2948_v30  ;;  %v4225_v45 = vsel %vm932_vm1, %v983_v20, %v984_v10  ;;  %v527_v38 = vmax.f32 %v476_v29, 0.0 }
 0x166   : > { %3161 = vrot.lane.b32.xlu0 %v3160_v13, %s3503_s20  ;;  %v3165_v44 = vpack.i.bf16 %v4107_v58, %v4219_v14  ;;  %v1627_v17 = vsel %vm1625_vm5, %v1597_v24, %v2949_v6  ;;  %v989_v52 = vrot.slane %v4195_v46, 2  ;;  %v990_v22 = vrot.slane %v4198_v59, 2 }
 0x167   : > { %v2974_v5 = vunpack.i.h.bf16 %v4110_v16  ;;  %v1754_v30 = vpack.c.bf16 %v1627_v17, %v1626_v51  ;;  %v2973_v20 = vunpack.i.l.bf16 %v4110_v16  ;;  %v591_v10 = vrot.slane %v527_v38, 7 }
 0x168   : > { %v4234_v42 = vpop.permute.xlu2 %3006  ;;  %3166 = vrot.lane.b32.xlu1 %v3165_v44, %s3504_s9  ;;  %v4239_v13 = vsel %vm636_vm0, 0.0, %v595_v34  ;;  %v4242_v33 = vsel %vm636_vm0, %v595_v34, 0.0  ;;  %v1780_v58 = vpack.c.bf16 %v4225_v45, %v4172_v4  ;;  %v491_v16 = vadd.f32 %v3698_v41, %v4177_v49 }
 0x169   : > { %v2957_v6 = vpop.permute.xlu0 %2956  ;;  %v2962_v24 = vpop.permute.xlu1 %2961  ;;  %2006 = vmatmul.bf16.vlgmr.msrb.gmra.mxu1 %v1754_v30  ;;  %v1661_v51 = vsel %vm1565_vm3, %v3797_v2, %v2954_v28  ;;  %v1660_v38 = vsel %vm1565_vm3, %v3750_v27, %v2953_v56  ;;  %v4253_v34 = vsel %vm636_vm0, 0.0, %v591_v10  ;;  %v688_v44 = vsel %vm636_vm0, %v591_v10, 0.0 }
 0x16a   : > { %v2964_v25 = vunpack.i.h.bf16 %v2962_v24  ;;  %v2963_v29 = vunpack.i.l.bf16 %v2962_v24  ;;  %5223 = vst [vmem:[#allocation23_spill] sm:$0xff] %v4253_v34  ;;  %v812_v17 = vrot.slane %v4253_v34, 1  ;;  %v813_v30 = vrot.slane %v688_v44, 1 }
 0x16b   : > { %v986_v24 = vrot.slane %v4253_v34, 2  ;;  %v987_v53 = vrot.slane %v688_v44, 2  ;;  %v2959_v41 = vunpack.i.h.bf16 %v2957_v6  ;;  %v2958_v49 = vunpack.i.l.bf16 %v2957_v6  ;;  %v4286_v44 = vpop.f32.mrf.mxu2 }
 0x16c   : > { %2778 = vmatmul.msk.bf16.gmra.mxu0 %vm1565_vm3, %v1780_v58  ;;  %v3170_v2 = vpack.i.bf16 %v4253_v34, %v4128_v0  ;;  %v1692_v27 = vsel %vm1595_vm4, %v1660_v38, %v2963_v29  ;;  %v4263_v56 = vsel %vm758_vm2, %v812_v17, %v813_v30  ;;  %v1693_v10 = vsel %vm1595_vm4, %v1661_v51, %v2964_v25  ;;  %v4279_v29 = vld [vmem:[%s5180_s2] ss:$0 sm:$0xff] }
 0x16d   : > { %v4266_v28 = vsel %vm932_vm1, %v986_v24, %v987_v53  ;;  %v1724_v23 = vsel %vm1625_vm5, %v1692_v27, %v2973_v20  ;;  %v3180_v58 = vpack.i.bf16 %v4263_v56, %v4156_v21  ;;  %v1725_v6 = vsel %vm1625_vm5, %v1693_v10, %v2974_v5 }
 0x16e   : > { %3171 = vrot.lane.b32.xlu2 %v3170_v2, %s3503_s20  ;;  %v3190_v0 = vpack.i.bf16 %v4266_v28, %v4225_v45  ;;  %v494_v53 = vadd.f32 %v4279_v29, %v493_v60  ;;  %v1260_v25 = vrot.slane %v4239_v13, 2  ;;  %v1261_v20 = vrot.slane %v4242_v33, 2 }
 0x16f   : > { %v1758_v51 = vpack.c.bf16 %v1725_v6, %v1724_v23  ;;  %v4289_v17 = vsel %vm932_vm1, %v989_v52, %v990_v22  ;;  %3181 = vrot.lane.b32.xlu0 %v3180_v58, %s3504_s9  ;;  %v5224_v60 = vrot.slane %v4198_v59, 1  ;;  %v5225_v24 = vrot.slane %v4195_v46, 1 }
 0x170   : > { %v4284_v38 = vpop.permute.xlu2 %3031  ;;  %3191 = vrot.lane.b32.xlu1 %v3190_v0, %s3505_s21  ;;  %v2979_v23 = vunpack.i.h.bf16 %v4150_v32  ;;  %v533_v52 = vmax.f32 %v491_v16, 0.0  ;;  %v2978_v22 = vunpack.i.l.bf16 %v4150_v32  ;;  %v1569_v58 = vsel %vm1565_vm3, %v3740_v18, %v2959_v41 }
 0x171   : > { %v2982_v5 = vpop.permute.xlu0 %2981  ;;  %v2967_v30 = vpop.permute.xlu1 %2966  ;;  %v4298_v2 = vsel %vm758_vm2, %v5225_v24, %v5224_v60  ;;  %2100 = vmatmul.bf16.gmra.mxu2 %v1758_v51  ;;  %v1568_v0 = vsel %vm1565_vm3, %v3723_v1, %v2958_v49  ;;  %v534_v59 = vmax.f32 %v494_v53, 0.0  ;;  %v819_v6 = vrot.slane %v4104_v8, 1 }
 0x172   : > { %v2969_v27 = vunpack.i.h.bf16 %v2967_v30  ;;  %v2968_v10 = vunpack.i.l.bf16 %v2967_v30  ;;  %v4310_v51 = vsel %vm932_vm1, %v1260_v25, %v1261_v20  ;;  %v3175_v16 = vpack.i.bf16 %v4172_v4, %v4195_v46 }
 0x173   : > { %v818_v41 = vrot.slane %v4101_v36, 1  ;;  %v597_v1 = vrot.slane %v533_v52, 7  ;;  %v3185_v8 = vpack.i.bf16 %v4203_v26, %v4298_v2  ;;  %v3195_v49 = vpack.i.bf16 %v4219_v14, %v4175_v15 }
 0x174   : > { %v1598_v60 = vsel %vm1595_vm4, %v1568_v0, %v2968_v10  ;;  %v1599_v24 = vsel %vm1595_vm4, %v1569_v58, %v2969_v27  ;;  %v2984_v30 = vunpack.i.h.bf16 %v2982_v5  ;;  %v2983_v25 = vunpack.i.l.bf16 %v2982_v5  ;;  %v2845_v58 = vld [vmem:[%s5183_s5 + $0x8] sm:$0xff] }
 0x175   : > { %v1628_v32 = vsel %vm1625_vm5, %v1598_v60, %v2978_v22  ;;  %v1629_v18 = vsel %vm1625_vm5, %v1599_v24, %v2979_v23  ;;  %v598_v20 = vrot.slane %v534_v59, 7  ;;  %v1789_v4 = vpack.c.bf16 %v3712_v54, %v4310_v51  ;;  %2387 = vmatpush.bf16.msrb.mxu3 %v2845_v58 }
 0x176   : > { %v1757_v53 = vpack.c.bf16 %v1629_v18, %v1628_v32  ;;  %3176 = vrot.lane.b32.xlu2 %v3175_v16, %s3503_s20  ;;  %v3004_v23 = vunpack.i.h.bf16 %v4192_v47  ;;  %v489_v10 = vadd.f32 %v4279_v29, %v4124_v39  ;;  %v4332_v5 = vsel %vm758_vm2, %v818_v41, %v819_v6  ;;  %v498_v18 = vpop.f32.mrf.mxu2 }
 0x177   : > { %3186 = vrot.lane.b32.xlu0 %v3185_v8, %s3504_s9  ;;  %v4338_v0 = vsel %vm636_vm0, %v597_v1, 0.0  ;;  %v1783_v39 = vpack.c.bf16 %v4289_v17, %v4266_v28  ;;  %2781 = vmatmul.msk.bf16.gmra.mxu3 %vm1565_vm3, %v1789_v4  ;;  %v3003_v24 = vunpack.i.l.bf16 %v4192_v47  ;;  %v1663_v6 = vsel %vm1565_vm3, %v3840_v40, %v2984_v30 }
 0x178   : > { %v4324_v27 = vpop.permute.xlu2 %3036  ;;  %3196 = vrot.lane.b32.xlu1 %v3195_v49, %s3505_s21  ;;  %v1662_v16 = vsel %vm1565_vm3, %v3800_v3, %v2983_v25  ;;  %v4349_v32 = vsel %vm636_vm0, 0.0, %v598_v20  ;;  %v4352_v41 = vsel %vm636_vm0, 0.0, %v597_v1  ;;  %v4356_v8 = vsel %vm636_vm0, %v598_v20, 0.0 }
 0x179   : > { %v2987_v52 = vpop.permute.xlu0 %2986  ;;  %v2992_v22 = vpop.permute.xlu1 %2991  ;;  %2011 = vmatmul.bf16.gmra.mxu1 %v1757_v53  ;;  %v1002_v49 = vrot.slane %v4338_v0, 2  ;;  %v3200_v3 = vpack.i.bf16 %v4101_v36, %v4225_v45  ;;  %v1004_v1 = vrot.slane %v4349_v32, 2  ;;  %v3205_v25 = vpack.i.bf16 %v4332_v5, %v4253_v34 }
 0x17a   : > { %v2994_v59 = vunpack.i.h.bf16 %v2992_v22  ;;  %v2993_v60 = vunpack.i.l.bf16 %v2992_v22  ;;  %v3210_v20 = vpack.i.bf16 %v4139_v7, %v4289_v17  ;;  %v2989_v22 = vunpack.i.h.bf16 %v2987_v52 }
 0x17b   : > { %v2988_v58 = vunpack.i.l.bf16 %v2987_v52  ;;  %v1001_v45 = vrot.slane %v4352_v41, 2 }
 0x17c   : > { %2779 = vmatmul.msk.bf16.gmra.mxu0 %vm1565_vm3, %v1783_v39  ;;  %v1694_v47 = vsel %vm1595_vm4, %v1662_v16, %v2993_v60  ;;  %v1695_v40 = vsel %vm1595_vm4, %v1663_v6, %v2994_v59  ;;  %v1005_v59 = vrot.slane %v4356_v8, 2  ;;  %v821_v60 = vrot.slane %v4113_v50, 1 }
 0x17d   : > { %v1726_v53 = vsel %vm1625_vm5, %v1694_v47, %v3003_v24  ;;  %v1727_v30 = vsel %vm1625_vm5, %v1695_v40, %v3004_v23  ;;  %v822_v23 = vrot.slane %v4116_v19, 1  ;;  %v532_v39 = vmax.f32 %v489_v10, 0.0 }
 0x17e   : > { %v1761_v4 = vpack.c.bf16 %v1727_v30, %v1726_v53  ;;  %3201 = vrot.lane.b32.xlu2 %v3200_v3, %s3503_s20  ;;  %v1216_v6 = vrot.slane %v4239_v13, 1  ;;  %v3009_v16 = vunpack.i.h.bf16 %v4234_v42  ;;  %v496_v40 = vadd.f32 %v4279_v29, %v4286_v44 }
 0x17f   : > { %3206 = vrot.lane.b32.xlu0 %v3205_v25, %s3504_s9  ;;  %v3008_v3 = vunpack.i.l.bf16 %v4234_v42  ;;  %v499_v53 = vadd.f32 %v4279_v29, %v498_v18  ;;  %v1571_v30 = vsel %vm1565_vm3, %v3790_v57, %v2989_v22  ;;  %v1570_v25 = vsel %vm1565_vm3, %v3764_v35, %v2988_v58  ;;  %v500_v58 = vpop.f32.mrf.mxu2 }
 0x180   : > { %v4375_v24 = vpop.permute.xlu2 %3051  ;;  %3211 = vrot.lane.b32.xlu1 %v3210_v20, %s3505_s21  ;;  %v4390_v20 = vsel %vm932_vm1, %v1001_v45, %v1002_v49  ;;  %v4393_v34 = vsel %vm932_vm1, %v1004_v1, %v1005_v59  ;;  %v596_v44 = vrot.slane %v532_v39, 7  ;;  %v4396_v42 = vsel %vm758_vm2, %v821_v60, %v822_v23 }
 0x181   : > { %v3017_v52 = vpop.permute.xlu0 %3016  ;;  %v2997_v47 = vpop.permute.xlu1 %2996  ;;  %2105 = vmatmul.bf16.gmra.mxu2 %v1761_v4  ;;  %5226 = vst [vmem:[#allocation24_spill] sm:$0xff] %v4396_v42  ;;  %v3220_v57 = vpack.i.bf16 %v4266_v28, %v4113_v50  ;;  %v535_v22 = vmax.f32 %v496_v40, 0.0  ;;  %v1217_v1 = vrot.slane %v4242_v33, 1  ;;  %v536_v45 = vmax.f32 %v499_v53, 0.0 }
 0x182   : > { %v2999_v19 = vunpack.i.h.bf16 %v2997_v47  ;;  %v2998_v10 = vunpack.i.l.bf16 %v2997_v47  ;;  %v1792_v60 = vpack.c.bf16 %v4393_v34, %v4390_v20  ;;  %v3019_v23 = vunpack.i.h.bf16 %v3017_v52 }
 0x183   : > { %v3018_v39 = vunpack.i.l.bf16 %v3017_v52  ;;  %v3215_v28 = vpack.i.bf16 %v4195_v46, %v4396_v42  ;;  %v3225_v47 = vpack.i.bf16 %v4298_v2, %v4263_v56  ;;  %v4418_v33 = vsel %vm636_vm0, %v596_v44, 0.0 }
 0x184   : > { %v1600_v4 = vsel %vm1595_vm4, %v1570_v25, %v2998_v10  ;;  %v1601_v18 = vsel %vm1595_vm4, %v1571_v30, %v2999_v19  ;;  %v4423_v10 = vunpack.i.h.bf16 %v4284_v38  ;;  %v600_v25 = vrot.slane %v536_v45, 7 }
 0x185   : > { %v1630_v35 = vsel %vm1625_vm5, %v1600_v4, %v3008_v3  ;;  %v1631_v49 = vsel %vm1625_vm5, %v1601_v18, %v3009_v16  ;;  %v4415_v16 = vsel %vm636_vm0, 0.0, %v596_v44  ;;  %v599_v3 = vrot.slane %v535_v22, 7 }
 0x186   : > { %v1760_v59 = vpack.c.bf16 %v1631_v49, %v1630_v35  ;;  %3221 = vrot.lane.b32.xlu2 %v3220_v57, %s3503_s20  ;;  %v3033_v44 = vunpack.i.l.bf16 %v4284_v38  ;;  %v1665_v4 = vsel %vm1565_vm3, %v3869_v12, %v3019_v23  ;;  %v1664_v18 = vsel %vm1565_vm3, %v3843_v43, %v3018_v39 }
 0x187   : > { %3216 = vrot.lane.b32.xlu0 %v3215_v28, %s3504_s9  ;;  %2782 = vmatmul.msk.bf16.gmra.mxu3 %vm1565_vm3, %v1792_v60  ;;  %v4434_v57 = vsel %vm758_vm2, %v1216_v6, %v1217_v1  ;;  %v3230_v22 = vpack.i.bf16 %v4239_v13, %v4289_v17  ;;  %v4439_v35 = vsel %vm636_vm0, %v600_v25, 0.0  ;;  %v4448_v12 = vsel %vm636_vm0, %v599_v3, 0.0 }
 0x188   : > { %v4412_v40 = vpop.permute.xlu2 %3056  ;;  %3226 = vrot.lane.b32.xlu1 %v3225_v47, %s3505_s21  ;;  %5227 = vst [vmem:[#allocation25_spill] sm:$0xff] %v4434_v57  ;;  %v4454_v17 = vsel %vm636_vm0, 0.0, %v600_v25  ;;  %v3235_v1 = vpack.i.bf16 %v4434_v57, %v4101_v36  ;;  %v3240_v45 = vpack.i.bf16 %v4310_v51, %v4146_v37  ;;  %v1011_v47 = vrot.slane %v4439_v35, 2 }
 0x189   : > { %v3022_v52 = vpop.permute.xlu0 %3021  ;;  %v3012_v19 = vpop.permute.xlu1 %3011  ;;  %2016 = vmatmul.bf16.gmra.mxu1 %v1760_v59  ;;  %v4445_v59 = vsel %vm636_vm0, 0.0, %v599_v3  ;;  %v1010_v28 = vrot.slane %v4454_v17, 2  ;;  %v999_v25 = vrot.slane %v4418_v33, 2 }
 0x18a   : > { %v4425_v53 = vunpack.i.h.bf16 %v3012_v19  ;;  %v3013_v30 = vunpack.i.l.bf16 %v3012_v19  ;;  %v3024_v23 = vunpack.i.h.bf16 %v3022_v52  ;;  %v3023_v39 = vunpack.i.l.bf16 %v3022_v52  ;;  %v503_v3 = vpop.f32.mrf.mxu2 }
 0x18b   : > { %v998_v19 = vrot.slane %v4415_v16, 2  ;;  %v4480_v36 = vsel %vm932_vm1, %v1010_v28, %v1011_v47 }
 0x18c   : > { %v1696_v49 = vsel %vm1595_vm4, %v1664_v18, %v3013_v30  ;;  %v1697_v38 = vsel %vm1595_vm4, %v1665_v4, %v4425_v53  ;;  %v501_v4 = vadd.f32 %v4279_v29, %v500_v58  ;;  %v1007_v18 = vrot.slane %v4445_v59, 2 }
 0x18d   : > { %v1728_v43 = vsel %vm1625_vm5, %v1696_v49, %v3033_v44  ;;  %v1729_v6 = vsel %vm1625_vm5, %v1697_v38, %v4423_v10  ;;  %v1008_v44 = vrot.slane %v4448_v12, 2  ;;  %v830_v58 = vrot.slane %v4349_v32, 1 }
 0x18e   : > { %v1764_v60 = vpack.c.bf16 %v1729_v6, %v1728_v43  ;;  %3231 = vrot.lane.b32.xlu2 %v3230_v22, %s3503_s20  ;;  %v3039_v22 = vunpack.i.h.bf16 %v4324_v27  ;;  %v504_v43 = vadd.f32 %v4279_v29, %v503_v3  ;;  %v3038_v6 = vunpack.i.l.bf16 %v4324_v27 }
 0x18f   : > { %3236 = vrot.lane.b32.xlu0 %v3235_v1, %s3504_s9  ;;  %v1573_v1 = vsel %vm1565_vm3, %v3833_v31, %v3024_v23  ;;  %v537_v57 = vmax.f32 %v501_v4, 0.0  ;;  %v4490_v23 = vsel %vm932_vm1, %v1007_v18, %v1008_v44  ;;  %v3250_v4 = vpack.i.bf16 %v4146_v37, %v4139_v7 }
 0x190   : > { %v4464_v30 = vpop.permute.xlu2 %3081  ;;  %3241 = vrot.lane.b32.xlu1 %v3240_v45, %s3505_s21  ;;  %v1572_v45 = vsel %vm1565_vm3, %v3811_v9, %v3023_v39  ;;  %v831_v9 = vrot.slane %v4356_v8, 1  ;;  %v538_v28 = vmax.f32 %v504_v43, 0.0  ;;  %v1795_v47 = vpack.c.bf16 %v4480_v36, %v4490_v23 }
 0x191   : > { %v3042_v51 = vpop.permute.xlu0 %3041  ;;  %v3027_v52 = vpop.permute.xlu1 %3026  ;;  %2110 = vmatmul.bf16.gmra.mxu2 %v1764_v60  ;;  %v3245_v60 = vpack.i.bf16 %v4396_v42, %v4332_v5  ;;  %v828_v44 = vrot.slane %v4338_v0, 1  ;;  %v827_v18 = vrot.slane %v4352_v41, 1  ;;  %v824_v8 = vrot.slane %v4415_v16, 1 }
 0x192   : > { %v3029_v49 = vunpack.i.h.bf16 %v3027_v52  ;;  %v3028_v38 = vunpack.i.l.bf16 %v3027_v52  ;;  %v3044_v42 = vunpack.i.h.bf16 %v3042_v51  ;;  %v3043_v46 = vunpack.i.l.bf16 %v3042_v51 }
 0x193   : > { %v601_v43 = vrot.slane %v537_v57, 7 }
 0x194   : > { %v1602_v52 = vsel %vm1595_vm4, %v1572_v45, %v3028_v38  ;;  %v1603_v3 = vsel %vm1595_vm4, %v1573_v1, %v3029_v49  ;;  %v825_v49 = vrot.slane %v4418_v33, 1  ;;  %v3054_v38 = vunpack.i.h.bf16 %v4375_v24 }
 0x195   : > { %v1632_v27 = vsel %vm1625_vm5, %v1602_v52, %v3038_v6  ;;  %v1633_v31 = vsel %vm1625_vm5, %v1603_v3, %v3039_v22  ;;  %v3255_v22 = vpack.i.bf16 %v4239_v13, %v4113_v50  ;;  %v1000_v6 = vsel %vm932_vm1, %v998_v19, %v999_v25 }
 0x196   : > { %v1763_v39 = vpack.c.bf16 %v1633_v31, %v1632_v27  ;;  %3246 = vrot.lane.b32.xlu2 %v3245_v60, %s3505_s21  ;;  %v602_v1 = vrot.slane %v538_v28, 7  ;;  %v3053_v33 = vunpack.i.l.bf16 %v4375_v24  ;;  %v1667_v57 = vsel %vm1565_vm3, %v3919_v61, %v3044_v42 }
 0x197   : > { %3251 = vrot.lane.b32.xlu0 %v3250_v4, %s3503_s20  ;;  %2783 = vmatmul.msk.bf16.gmra.mxu3 %vm1565_vm3, %v1795_v47  ;;  %v1666_v45 = vsel %vm1565_vm3, %v3925_v63, %v3043_v46  ;;  %v4519_v60 = vsel %vm758_vm2, %v830_v58, %v831_v9  ;;  %v4525_v3 = vsel %vm758_vm2, %v827_v18, %v828_v44  ;;  %v4535_v42 = vsel %vm636_vm0, 0.0, %v601_v43  ;;  %v505_v4 = vpop.f32.mrf.mxu2 }
 0x198   : > { %3256 = vrot.lane.b32.xlu1 %v3255_v22, %s3504_s9  ;;  %v4509_v37 = vpop.permute.xlu2 %3086  ;;  %v4522_v52 = vsel %vm636_vm0, %v602_v1, 0.0  ;;  %v3260_v24 = vpack.i.bf16 %v4390_v20, %v1000_v6  ;;  %v3265_v61 = vpack.i.bf16 %v4349_v32, %v4352_v41  ;;  %v4538_v58 = vsel %vm636_vm0, %v601_v43, 0.0 }
 0x199   : > { %v4507_v51 = vpop.permute.xlu0 %3061  ;;  %v3047_v7 = vpop.permute.xlu1 %3046  ;;  %2021 = vmatmul.bf16.gmra.mxu1 %v1763_v39  ;;  %v4541_v27 = vsel %vm636_vm0, 0.0, %v602_v1  ;;  %v1017_v28 = vrot.slane %v4522_v52, 2  ;;  %v3270_v47 = vpack.i.bf16 %v4519_v60, %v4525_v3  ;;  %v3058_v22 = vunpack.i.l.bf16 %v4412_v40 }
 0x19a   : > { %v3049_v13 = vunpack.i.h.bf16 %v3047_v7  ;;  %v3048_v0 = vunpack.i.l.bf16 %v3047_v7  ;;  %v3063_v9 = vunpack.i.l.bf16 %v4507_v51  ;;  %v1016_v39 = vrot.slane %v4541_v27, 2 }
 0x19b   : > { %v1014_v44 = vrot.slane %v4538_v58, 2  ;;  %v4554_v43 = vsel %vm758_vm2, %v824_v8, %v825_v49  ;;  %v1013_v7 = vrot.slane %v4535_v42, 2  ;;  %v3059_v1 = vunpack.i.h.bf16 %v4412_v40 }
 0x19c   : > { %v1698_v19 = vsel %vm1595_vm4, %v1666_v45, %v3048_v0  ;;  %v1699_v25 = vsel %vm1595_vm4, %v1667_v57, %v3049_v13  ;;  %v506_v0 = vadd.f32 %v4279_v29, %v505_v4  ;;  %v4562_v57 = vsel %vm932_vm1, %v1016_v39, %v1017_v28 }
 0x19d   : > { %v1730_v63 = vsel %vm1625_vm5, %v1698_v19, %v3053_v33  ;;  %v1731_v46 = vsel %vm1625_vm5, %v1699_v25, %v3054_v38  ;;  %v1574_v33 = vsel %vm1565_vm3, %v3876_v48, %v3063_v9  ;;  %v3275_v8 = vpack.i.bf16 %v4393_v34, %v4554_v43 }
 0x19e   : > { %v1767_v31 = vpack.c.bf16 %v1731_v46, %v1730_v63  ;;  %3261 = vrot.lane.b32.xlu2 %v3260_v24, %s3505_s21  ;;  %v3064_v19 = vunpack.i.h.bf16 %v4507_v51  ;;  %v1634_v29 = vsel %vm1625_vm5, %v4213_v11, %v3058_v22  ;;  %v4574_v25 = vsel %vm932_vm1, %v1013_v7, %v1014_v44 }
 0x19f   : > { %3266 = vrot.lane.b32.xlu0 %v3265_v61, %s3503_s20  ;;  %v539_v61 = vmax.f32 %v506_v0, 0.0  ;;  %v1798_v63 = vpack.c.bf16 %v4562_v57, %v4574_v25  ;;  %v3285_v51 = vpack.i.bf16 %v4352_v41, %v4415_v16  ;;  %v834_v9 = vrot.slane %v4448_v12, 1 }
 0x1a0   : > { %3271 = vrot.lane.b32.xlu1 %v3270_v47, %s3504_s9  ;;  %v4564_v45 = vpop.permute.xlu2 %3111  ;;  %v836_v39 = vrot.slane %v4454_v17, 1  ;;  %v837_v28 = vrot.slane %v4439_v35, 1  ;;  %v833_v47 = vrot.slane %v4445_v59, 1  ;;  %v1668_v4 = vsel %vm1565_vm3, %v3922_v62, %v3064_v19  ;;  %v2844_v35 = vld [vmem:[%s5183_s5] sm:$0xff] }
 0x1a1   : > { %v3072_v18 = vpop.permute.xlu0 %3071  ;;  %v3067_v38 = vpop.permute.xlu1 %3066  ;;  %2115 = vmatmul.bf16.gmra.mxu2 %v1767_v31  ;;  %v3280_v31 = vpack.i.bf16 %v4445_v59, %v1000_v6  ;;  %v3084_v62 = vunpack.i.h.bf16 %v4464_v30  ;;  %v3083_v7 = vunpack.i.l.bf16 %v4464_v30  ;;  %2388 = vmatpush.bf16.msrb.mxu3 %v2844_v35  ;;  %v3305_v35 = vpack.i.bf16 %v4480_v36, %v4519_v60 }
 0x1a2   : > { %v3068_v13 = vunpack.i.l.bf16 %v3067_v38  ;;  %v3069_v48 = vunpack.i.h.bf16 %v3067_v38  ;;  %v3073_v46 = vunpack.i.l.bf16 %v3072_v18  ;;  %v603_v38 = vrot.slane %v539_v61, 7 }
 0x1a3   : > { %v4602_v0 = vsel %vm758_vm2, %v833_v47, %v834_v9 }
 0x1a4   : > { %v1604_v49 = vsel %vm1595_vm4, %v1574_v33, %v3068_v13  ;;  %v1700_v12 = vsel %vm1595_vm4, %v1668_v4, %v3069_v48  ;;  %v1669_v13 = vsel %vm1565_vm3, %v3985_v55, %v3073_v46  ;;  %v4618_v48 = vsel %vm636_vm0, %v603_v38, 0.0  ;;  %v5228_v46 = vld [vmem:[#allocation9_spill] sm:$0xff] }
 0x1a5   : > { %v1635_v40 = vsel %vm1625_vm5, %v1604_v49, %v3059_v1  ;;  %v4605_v1 = vsel %vm758_vm2, %v836_v39, %v837_v28  ;;  %v3290_v49 = vpack.i.bf16 %v4525_v3, %v4490_v23  ;;  %v1732_v19 = vsel %vm1625_vm5, %v1700_v12, %v3083_v7 }
 0x1a6   : > { %v1766_v24 = vpack.c.bf16 %v1635_v40, %v1634_v29  ;;  %3276 = vrot.lane.b32.xlu2 %v3275_v8, %s3505_s21  ;;  %v3074_v8 = vunpack.i.h.bf16 %v3072_v18  ;;  %v4615_v40 = vsel %vm636_vm0, 0.0, %v603_v38  ;;  %v3295_v18 = vpack.i.bf16 %v4390_v20, %v4454_v17 }
 0x1a7   : > { %3281 = vrot.lane.b32.xlu0 %v3280_v31, %s3503_s20  ;;  %2784 = vmatmul.msk.bf16.gmra.mxu3 %vm1565_vm3, %v1798_v63  ;;  %v3300_v63 = vpack.i.bf16 %v4605_v1, %v4602_v0  ;;  %v1264_v9 = vrot.slane %v4618_v48, 2  ;;  %v3089_v4 = vunpack.i.h.bf16 %v4509_v37 }
 0x1a8   : > { %3286 = vrot.lane.b32.xlu1 %v3285_v51, %s3504_s9  ;;  %v4612_v29 = vpop.permute.xlu2 %3126  ;;  %v1575_v31 = vsel %vm1565_vm3, %v5228_v46, %v3074_v8  ;;  %v1263_v51 = vrot.slane %v4615_v40, 2 }
 0x1a9   : > { %v4590_v22 = vpop.permute.xlu0 %3091  ;;  %v3077_v6 = vpop.permute.xlu1 %3076  ;;  %2026 = vmatmul.bf16.gmra.mxu1 %v1766_v24 }
 0x1aa   : > { %v3078_v44 = vunpack.i.l.bf16 %v3077_v6  ;;  %v3079_v55 = vunpack.i.h.bf16 %v3077_v6  ;;  %v3093_v61 = vunpack.i.l.bf16 %v4590_v22  ;;  %v3088_v6 = vunpack.i.l.bf16 %v4509_v37 }
 0x1ac   : > { %v1701_v33 = vsel %vm1595_vm4, %v1669_v13, %v3078_v44  ;;  %v1605_v20 = vsel %vm1595_vm4, %v1575_v31, %v3079_v55  ;;  %v5229_v44 = vld [vmem:[#allocation10_spill] sm:$0xff]  ;;  %v4643_v13 = vsel %vm932_vm1, %v1263_v51, %v1264_v9  ;;  %v3315_v55 = vpack.i.bf16 %v4445_v59, %v4349_v32 }
 0x1ad   : > { %v1733_v30 = vsel %vm1625_vm5, %v1701_v33, %v3084_v62  ;;  %v1576_v38 = vsel %vm1565_vm3, %v5229_v44, %v3093_v61  ;;  %v1636_v62 = vsel %vm1625_vm5, %v1605_v20, %v3088_v6  ;;  %v3094_v33 = vunpack.i.h.bf16 %v4590_v22 }
 0x1ae   : > { %v1770_v24 = vpack.c.bf16 %v1733_v30, %v1732_v19  ;;  %3291 = vrot.lane.b32.xlu2 %v3290_v49, %s3505_s21  ;;  %v1801_v37 = vpack.c.bf16 %v3712_v54, %v4643_v13  ;;  %v840_v49 = vrot.slane %v4538_v58, 1  ;;  %v3310_v30 = vpack.i.bf16 %v4535_v42, %v4393_v34 }
 0x1af   : > { %3296 = vrot.lane.b32.xlu0 %v3295_v18, %s3503_s20  ;;  %v843_v61 = vrot.slane %v4522_v52, 1  ;;  %v839_v54 = vrot.slane %v4535_v42, 1  ;;  %v3114_v31 = vunpack.i.h.bf16 %v4564_v45  ;;  %v3113_v9 = vunpack.i.l.bf16 %v4564_v45 }
 0x1b0   : > { %3301 = vrot.lane.b32.xlu1 %v3300_v63, %s3504_s9  ;;  %v4656_v22 = vpop.permute.xlu2 %3141  ;;  %v5230_v63 = vld [vmem:[#allocation13_spill] sm:$0xff]  ;;  %v3320_v6 = vpack.i.bf16 %v4602_v0, %v4574_v25 }
 0x1b1   : > { %v3102_v39 = vpop.permute.xlu0 %3101  ;;  %v3097_v28 = vpop.permute.xlu1 %3096  ;;  %2120 = vmatmul.bf16.gmra.mxu2 %v1770_v24  ;;  %v842_v24 = vrot.slane %v4541_v27, 1  ;;  %v1670_v34 = vsel %vm1565_vm3, %v5230_v63, %v3094_v33  ;;  %v4670_v20 = vsel %vm758_vm2, %v839_v54, %v840_v49  ;;  %v3128_v54 = vunpack.i.l.bf16 %v4612_v29  ;;  %v5233_v63 = vld [vmem:[#allocation12_spill] sm:$0xff] }
 0x1b2   : > { %v3098_v47 = vunpack.i.l.bf16 %v3097_v28  ;;  %v3099_v19 = vunpack.i.h.bf16 %v3097_v28  ;;  %v3103_v18 = vunpack.i.l.bf16 %v3102_v39  ;;  %v5231_v28 = vld [vmem:[#allocation16_spill] sm:$0xff] }
 0x1b4   : > { %v1606_v12 = vsel %vm1595_vm4, %v1576_v38, %v3098_v47  ;;  %v1702_v51 = vsel %vm1595_vm4, %v1670_v34, %v3099_v19  ;;  %v1671_v47 = vsel %vm1565_vm3, %v5231_v28, %v3103_v18  ;;  %v3104_v38 = vunpack.i.h.bf16 %v3102_v39 }
 0x1b5   : > { %v1637_v7 = vsel %vm1625_vm5, %v1606_v12, %v3089_v4  ;;  %v4673_v4 = vsel %vm758_vm2, %v842_v24, %v843_v61  ;;  %v1734_v12 = vsel %vm1625_vm5, %v1702_v51, %v3113_v9  ;;  %v4692_v61 = vpop.f32.mrf.mxu0  ;;  %v3129_v18 = vunpack.i.h.bf16 %v4612_v29 }
 0x1b6   : > { %v1769_v8 = vpack.c.bf16 %v1637_v7, %v1636_v62  ;;  %3306 = vrot.lane.b32.xlu2 %v3305_v35, %s3505_s21  ;;  %v3325_v62 = vpack.i.bf16 %v4490_v23, %v4541_v27  ;;  %v3330_v7 = vpack.i.bf16 %v4673_v4, %v4670_v20  ;;  %v3340_v29 = vpack.i.bf16 %v4615_v40, %v4480_v36 }
 0x1b7   : > { %3311 = vrot.lane.b32.xlu0 %v3310_v30, %s3503_s20  ;;  %2785 = vmatmul.msk.bf16.gmra.mxu3 %vm1565_vm3, %v1801_v37  ;;  %v5232_v37 = vld [vmem:[#allocation11_spill] sm:$0xff] }
 0x1b8   : > { %3316 = vrot.lane.b32.xlu1 %v3315_v55, %s3504_s9  ;;  %v1577_v49 = vsel %vm1565_vm3, %v5232_v37, %v3104_v38  ;;  %v1219_v38 = vrot.slane %v4615_v40, 1 }
 0x1b9   : > { %v3117_v58 = vpop.permute.xlu0 %3116  ;;  %v3107_v46 = vpop.permute.xlu1 %3106  ;;  %2031 = vmatmul.bf16.gmra.mxu1 %v1769_v8 }
 0x1ba   : > { %v3108_v52 = vunpack.i.l.bf16 %v3107_v46  ;;  %v3109_v45 = vunpack.i.h.bf16 %v3107_v46  ;;  %v3118_v8 = vunpack.i.l.bf16 %v3117_v58  ;;  %v4689_v19 = vpop.permute.xlu2 %3156  ;;  %v3335_v46 = vpack.i.bf16 %v4562_v57, %v4605_v1 }
 0x1bb   : > { %v3119_v28 = vunpack.i.h.bf16 %v3117_v58 }
 0x1bc   : > { %v1703_v44 = vsel %vm1595_vm4, %v1671_v47, %v3108_v52  ;;  %v1607_v23 = vsel %vm1595_vm4, %v1577_v49, %v3109_v45  ;;  %v1578_v34 = vsel %vm1565_vm3, %v5233_v63, %v3118_v8  ;;  %v3345_v52 = vpack.i.bf16 %v4535_v42, %v4454_v17  ;;  %v5234_v47 = vld [vmem:[#allocation20_spill] sm:$0xff] }
 0x1bd   : > { %v1735_v35 = vsel %vm1625_vm5, %v1703_v44, %v3114_v31  ;;  %v1638_v51 = vsel %vm1625_vm5, %v1607_v23, %v3128_v54  ;;  %v3350_v49 = vpack.i.bf16 %v4670_v20, %v4643_v13 }
 0x1be   : > { %3321 = vrot.lane.b32.xlu2 %v3320_v6, %s3505_s21  ;;  %v1773_v33 = vpack.c.bf16 %v1735_v35, %v1734_v12  ;;  %v1220_v12 = vrot.slane %v4618_v48, 1 }
 0x1bf   : > { %3326 = vrot.lane.b32.xlu0 %v3325_v62, %s3503_s20 }
 0x1c0   : > { %3331 = vrot.lane.b32.xlu1 %v3330_v7, %s3504_s9  ;;  %v5235_v7 = vld [vmem:[#allocation17_spill] sm:$0xff]  ;;  %v4721_v8 = vsel %vm758_vm2, %v1219_v38, %v1220_v12  ;;  %v3144_v12 = vunpack.i.h.bf16 %v4656_v22 }
 0x1c1   : > { %v3132_v39 = vpop.permute.xlu0 %3131  ;;  %2125 = vmatmul.bf16.gmra.mxu2 %v1773_v33  ;;  %v3122_v30 = vpop.permute.xlu1 %3121  ;;  %v1672_v36 = vsel %vm1565_vm3, %v5235_v7, %v3119_v28  ;;  %v3355_v63 = vpack.i.bf16 %v4541_v27, %v4721_v8 }
 0x1c2   : > { %v3133_v55 = vunpack.i.l.bf16 %v3132_v39  ;;  %v3123_v24 = vunpack.i.l.bf16 %v3122_v30  ;;  %v3124_v35 = vunpack.i.h.bf16 %v3122_v30  ;;  %v3134_v54 = vunpack.i.h.bf16 %v3132_v39 }
 0x1c4   : > { %v1608_v31 = vsel %vm1595_vm4, %v1578_v34, %v3123_v24  ;;  %v1673_v6 = vsel %vm1565_vm3, %v5234_v47, %v3133_v55  ;;  %v1704_v48 = vsel %vm1595_vm4, %v1672_v36, %v3124_v35  ;;  %v4729_v24 = vpop.f32.mrf.mxu0 }
 0x1c5   : > { %v1639_v9 = vsel %vm1625_vm5, %v1608_v31, %v3129_v18  ;;  %v1705_v62 = vsel %vm1595_vm4, %v1673_v6, %v4425_v53  ;;  %v3143_v18 = vunpack.i.l.bf16 %v4656_v22  ;;  %v5236_v31 = vld [vmem:[#allocation15_spill] sm:$0xff] }
 0x1c6   : > { %3336 = vrot.lane.b32.xlu2 %v3335_v46, %s3505_s21  ;;  %v1772_v44 = vpack.c.bf16 %v1639_v9, %v1638_v51  ;;  %v1737_v55 = vsel %vm1625_vm5, %v1705_v62, %v4423_v10  ;;  %v5237_v51 = vld [vmem:[#allocation14_spill] sm:$0xff] }
 0x1c7   : > { %3341 = vrot.lane.b32.xlu0 %v3340_v29, %s3503_s20  ;;  %v1579_v39 = vsel %vm1565_vm3, %v5237_v51, %v3134_v54  ;;  %v5239_v51 = vld [vmem:[#allocation19_spill] sm:$0xff] }
 0x1c8   : > { %3346 = vrot.lane.b32.xlu1 %v3345_v52, %s3504_s9  ;;  %v4714_v45 = vpop.permute.xlu2 %3171  ;;  %v1580_v52 = vsel %vm1565_vm3, %v5236_v31, %v3143_v18 }
 0x1c9   : > { %v3137_v58 = vpop.permute.xlu1 %3136  ;;  %2036 = vmatmul.bf16.gmra.mxu1 %v1772_v44  ;;  %v3147_v37 = vpop.permute.xlu0 %3146  ;;  %v3360_v44 = vpack.i.bf16 %v4562_v57, %v4574_v25  ;;  %v5238_v57 = vld [vmem:[#allocation21_spill] sm:$0xff] }
 0x1ca   : > { %v3138_v33 = vunpack.i.l.bf16 %v3137_v58  ;;  %v3149_v34 = vunpack.i.h.bf16 %v3147_v37  ;;  %v3148_v46 = vunpack.i.l.bf16 %v3147_v37  ;;  %v3139_v9 = vunpack.i.h.bf16 %v3137_v58 }
 0x1cb   : > { %v3158_v58 = vunpack.i.l.bf16 %v4689_v19  ;;  %v1674_v25 = vsel %vm1565_vm3, %v5238_v57, %v3144_v12 }
 0x1cc   : > { %v1736_v30 = vsel %vm1625_vm5, %v1704_v48, %v3138_v33  ;;  %v1609_v6 = vsel %vm1595_vm4, %v1579_v39, %v3148_v46  ;;  %v1610_v29 = vsel %vm1595_vm4, %v1580_v52, %v3149_v34  ;;  %v4752_v62 = vpop.f32.mrf.mxu0  ;;  %v3159_v34 = vunpack.i.h.bf16 %v4689_v19  ;;  %v4777_v19 = vld [vmem:[%s5182_s4] ss:$0 sm:$0xff] }
 0x1cd   : > { %v1776_v23 = vpack.c.bf16 %v1737_v55, %v1736_v30  ;;  %v1640_v35 = vsel %vm1625_vm5, %v1609_v6, %v3139_v9  ;;  %v1675_v37 = vsel %vm1565_vm3, %v4175_v15, %v3158_v58  ;;  %v3173_v46 = vunpack.i.l.bf16 %v4714_v45 }
 0x1ce   : > { %3351 = vrot.lane.b32.xlu2 %v3350_v49, %s3505_s21  ;;  %v1581_v39 = vsel %vm1565_vm3, %v5239_v51, %v3159_v34 }
 0x1cf   : > { %3356 = vrot.lane.b32.xlu0 %v3355_v63, %s3504_s9 }
 0x1d0   : > { %901 = vrot.lane.b32.xlu1 %v4673_v4, %s3505_s21  ;;  %v4742_v47 = vpop.permute.xlu2 %3176 }
 0x1d1   : > { %2130 = vmatmul.bf16.gmra.mxu2 %v1776_v23  ;;  %v3152_v13 = vpop.permute.xlu1 %3151 }
 0x1d2   : > { %v3153_v28 = vunpack.i.l.bf16 %v3152_v13  ;;  %v3154_v49 = vunpack.i.h.bf16 %v3152_v13 }
 0x1d4   : > { %v1641_v38 = vsel %vm1625_vm5, %v1610_v29, %v3153_v28  ;;  %v4769_v31 = vpop.f32.mrf.mxu0  ;;  %v1611_v29 = vsel %vm1595_vm4, %v1581_v39, %v3173_v46 }
 0x1d5   : > { %v1775_v7 = vpack.c.bf16 %v1641_v38, %v1640_v35 }
 0x1d6   : > { %3361 = vrot.lane.b32.xlu2 %v3360_v44, %s3503_s20  ;;  %s2567_s20 = scalar_lea.sflag [#allocation4], %s3634_s22 }
 0x1d7   : > { %1172 = vrot.lane.b32.xlu0 %v4615_v40, %s3504_s9  ;;  %s3448_s9 = scalar_lea.hbm %s3447_s28, 256 }
 0x1d8   : > { %v3162_v36 = vpop.permute.xlu0 %3161  ;;  %v4763_v18 = vpop.permute.xlu2 %3201  ;;  %p3449_p6 = scmp.ne.s32.totalorder %s3447_s28, %s3448_s9  ;;  %p3454_p1 = scmp.lt.s32.totalorder %s3452_s10, %s3448_s9 }
 0x1d9   : > { %v3164_v33 = vunpack.i.h.bf16 %v3162_v36  ;;  %v3163_v48 = vunpack.i.l.bf16 %v3162_v36  ;;  %2041 = vmatmul.bf16.gmra.mxu1 %v1775_v7 }
 0x1da   : > { %v3167_v22 = vpop.permute.xlu1 %3166  ;;  %p3450_p9 = pnand %p3449_p6, %p3598_p11  ;;  %p3455_p3 = por %p3454_p1, %p3453_p0 }
 0x1db   : > { %v1706_v30 = vsel %vm1595_vm4, %v1674_v25, %v3163_v48  ;;  %v3168_v55 = vunpack.i.l.bf16 %v3167_v22  ;;  %v1707_v23 = vsel %vm1595_vm4, %v1675_v37, %v3164_v33  ;;  %v3169_v15 = vunpack.i.h.bf16 %v3167_v22 }
 0x1dc   : > { %v1738_v40 = vsel %vm1625_vm5, %v1706_v30, %v3154_v49  ;;  %v3174_v33 = vunpack.i.h.bf16 %v4714_v45  ;;  %v3178_v25 = vunpack.i.l.bf16 %v4742_v47  ;;  %v4792_v30 = vpop.f32.mrf.mxu0  ;;  %p3451_p13 = pneg %p3450_p9 }
 0x1dd   : > { %v1739_v54 = vsel %vm1625_vm5, %v1707_v23, %v3168_v55  ;;  %v1642_v35 = vsel %vm1625_vm5, %v4213_v11, %v3169_v15 }
 0x1de   : > { %v1779_v63 = vpack.c.bf16 %v1739_v54, %v1738_v40  ;;  %p3456_p4 = pnand %p3455_p3, %p3451_p13 }
 0x1e0   : > { %v4782_v58 = vpop.permute.xlu2 %3221 }
 0x1e1   : > { %2135 = vmatmul.bf16.gmra.mxu2 %v1779_v63  ;;  %v3182_v13 = vpop.permute.xlu0 %3181 }
 0x1e2   : > { %v3192_v52 = vpop.permute.xlu1 %3191  ;;  %v3183_v9 = vunpack.i.l.bf16 %v3182_v13  ;;  %v3184_v55 = vunpack.i.h.bf16 %v3182_v13  ;;  %v3179_v13 = vunpack.i.h.bf16 %v4742_v47 }
 0x1e3   : > { %v3193_v28 = vunpack.i.l.bf16 %v3192_v52  ;;  %v2096_v6 = vpop.f32.mrf.mxu2  ;;  %v3194_v44 = vunpack.i.h.bf16 %v3192_v52 }
 0x1e4   : > { %v1643_v38 = vsel %vm1625_vm5, %v1611_v29, %v3183_v9 }
 0x1e5   : > { %v1676_v7 = vsel %vm1565_vm3, %v4219_v14, %v3193_v28  ;;  %v1778_v36 = vpack.c.bf16 %v1643_v38, %v1642_v35  ;;  %v1677_v48 = vsel %vm1565_vm3, %v4263_v56, %v3194_v44  ;;  %v3203_v38 = vunpack.i.l.bf16 %v4763_v18 }
 0x1e6   : > { %v2007_v12 = vpop.f32.mrf.mxu1  ;;  %v1708_v49 = vsel %vm1595_vm4, %v1676_v7, %v3174_v33  ;;  %v1709_v45 = vsel %vm1595_vm4, %v1677_v48, %v3178_v25  ;;  %v4809_v33 = vpop.f32.mrf.mxu0 }
 0x1e7   : > { %v2008_v57 = vadd.f32 %v4777_v19, %v2007_v12  ;;  %v1740_v56 = vsel %vm1625_vm5, %v1708_v49, %v3184_v55 }
 0x1e8   : > { %v4801_v39 = vpop.permute.xlu2 %3231 }
 0x1e9   : > { %2046 = vmatmul.bf16.gmra.mxu1 %v1778_v36  ;;  %v3187_v22 = vpop.permute.xlu0 %3186  ;;  %v2097_v54 = vadd.f32 %v2096_v6, %v2008_v57 }
 0x1ea   : > { %v3197_v37 = vpop.permute.xlu1 %3196  ;;  %v3188_v23 = vunpack.i.l.bf16 %v3187_v22 }
 0x1eb   : > { %v2098_v14 = vpop.f32.mrf.mxu2  ;;  %v3198_v40 = vunpack.i.l.bf16 %v3197_v37  ;;  %v3199_v34 = vunpack.i.h.bf16 %v3197_v37  ;;  %v2186_v9 = vadd.f32 %v4692_v61, %v2097_v54 }
 0x1ec   : > { %v1741_v63 = vsel %vm1625_vm5, %v1709_v45, %v3188_v23  ;;  %v3204_v23 = vunpack.i.h.bf16 %v4763_v18 }
 0x1ed   : > { %v1782_v15 = vpack.c.bf16 %v1741_v63, %v1740_v56  ;;  %v1582_v51 = vsel %vm1565_vm3, %v4156_v21, %v3198_v40  ;;  %v1583_v6 = vsel %vm1565_vm3, %v4203_v26, %v3199_v34  ;;  %v3189_v21 = vunpack.i.h.bf16 %v3187_v22 }
 0x1ee   : > { %v2009_v46 = vpop.f32.mrf.mxu1  ;;  %v1612_v35 = vsel %vm1595_vm4, %v1582_v51, %v3179_v13  ;;  %v2265_v61 = vmax.f32 %v2186_v9, 0.0  ;;  %v1613_v57 = vsel %vm1595_vm4, %v1583_v6, %v3203_v38  ;;  %v3223_v56 = vunpack.i.l.bf16 %v4782_v58  ;;  %v4828_v6 = vpop.f32.mrf.mxu0 }
 0x1ef   : > { %v2010_v52 = vadd.f32 %v4777_v19, %v2009_v46  ;;  %v1644_v37 = vsel %vm1625_vm5, %v1612_v35, %v3189_v21  ;;  %v3224_v35 = vunpack.i.h.bf16 %v4782_v58 }
 0x1f0   : > { %v4822_v63 = vpop.permute.xlu2 %3246 }
 0x1f1   : > { %v2099_v28 = vadd.f32 %v2098_v14, %v2010_v52  ;;  %2140 = vmatmul.bf16.gmra.mxu2 %v1782_v15  ;;  %v3207_v29 = vpop.permute.xlu0 %3206 }
 0x1f2   : > { %v3212_v44 = vpop.permute.xlu1 %3211  ;;  %v3208_v7 = vunpack.i.l.bf16 %v3207_v29  ;;  %v3209_v46 = vunpack.i.h.bf16 %v3207_v29 }
 0x1f3   : > { %v2188_v12 = vadd.f32 %v4729_v24, %v2099_v28  ;;  %v3213_v47 = vunpack.i.l.bf16 %v3212_v44  ;;  %v3214_v25 = vunpack.i.h.bf16 %v3212_v44 }
 0x1f4   : > { %v2101_v36 = vpop.f32.mrf.mxu2  ;;  %v1645_v49 = vsel %vm1625_vm5, %v1613_v57, %v3208_v7  ;;  %v3233_v57 = vunpack.i.l.bf16 %v4801_v39 }
 0x1f5   : > { %v2266_v48 = vmax.f32 %v2188_v12, 0.0  ;;  %v1781_v55 = vpack.c.bf16 %v1645_v49, %v1644_v37  ;;  %v1678_v22 = vsel %vm1565_vm3, %v4298_v2, %v3213_v47  ;;  %v1679_v40 = vsel %vm1565_vm3, %v4332_v5, %v3214_v25  ;;  %v5240_v12 = vld [vmem:[#allocation23_spill] sm:$0xff]  ;;  %v5241_v47 = vld [vmem:[#allocation22_spill] sm:$0xff] }
 0x1f6   : > { %v2012_v26 = vpop.f32.mrf.mxu1  ;;  %v1710_v34 = vsel %vm1595_vm4, %v1678_v22, %v3204_v23  ;;  %v1711_v51 = vsel %vm1595_vm4, %v1679_v40, %v3223_v56  ;;  %v4840_v22 = vpop.f32.mrf.mxu3 }
 0x1f7   : > { %v2297_v24 = vpack.c.bf16 %v2266_v48, %v2265_v61  ;;  %v2013_v14 = vadd.f32 %v4777_v19, %v2012_v26  ;;  %v1742_v28 = vsel %vm1625_vm5, %v1710_v34, %v3209_v46  ;;  %v5243_v34 = vld [vmem:[#allocation24_spill] sm:$0xff] }
 0x1f9   : > { %2051 = vmatmul.bf16.gmra.mxu1 %v1781_v55  ;;  %2794 = vmatmul.msk.bf16.vlgmr.msrb.gmra.mxu3 %vm1565_vm3, %v2297_v24  ;;  %v3217_v45 = vpop.permute.xlu0 %3216  ;;  %v2102_v52 = vadd.f32 %v2101_v36, %v2013_v14 }
 0x1fa   : > { %v3227_v54 = vpop.permute.xlu1 %3226  ;;  %v3218_v2 = vunpack.i.l.bf16 %v3217_v45  ;;  %v3219_v37 = vunpack.i.h.bf16 %v3217_v45 }
 0x1fb   : > { %v3228_v15 = vunpack.i.l.bf16 %v3227_v54  ;;  %v3229_v13 = vunpack.i.h.bf16 %v3227_v54  ;;  %v2191_v21 = vadd.f32 %v4752_v62, %v2102_v52  ;;  %v3262_v62 = vpop.permute.xlu2 %3261  ;;  %v5242_v54 = vld [vmem:[#allocation25_spill] sm:$0xff] }
 0x1fc   : > { %v2103_v18 = vpop.f32.mrf.mxu2  ;;  %v1743_v5 = vsel %vm1625_vm5, %v1711_v51, %v3218_v2  ;;  %v4850_v51 = vpop.f32.mrf.mxu0 }
 0x1fd   : > { %v1785_v38 = vpack.c.bf16 %v1743_v5, %v1742_v28  ;;  %v1584_v29 = vsel %vm1565_vm3, %v5240_v12, %v3228_v15  ;;  %v1585_v36 = vsel %vm1565_vm3, %v5241_v47, %v3229_v13  ;;  %v2267_v23 = vmax.f32 %v2191_v21, 0.0 }
 0x1fe   : > { %v2014_v9 = vpop.f32.mrf.mxu1  ;;  %v1614_v26 = vsel %vm1595_vm4, %v1584_v29, %v3224_v35  ;;  %v1615_v14 = vsel %vm1595_vm4, %v1585_v36, %v3233_v57  ;;  %v3234_v15 = vunpack.i.h.bf16 %v4801_v39  ;;  %v3249_v12 = vunpack.i.h.bf16 %v4822_v63  ;;  %v4862_v57 = vpop.f32.mrf.mxu3 }
 0x1ff   : > { %v2015_v44 = vadd.f32 %v4777_v19, %v2014_v9  ;;  %v1646_v45 = vsel %vm1625_vm5, %v1614_v26, %v3219_v37  ;;  %v3248_v39 = vunpack.i.l.bf16 %v4822_v63  ;;  %v5244_v37 = vld [vmem:[#allocation18_spill] sm:$0xff] }
 0x200   : > { %v1587_v63 = vsel %vm1565_vm3, %v4113_v50, %v3249_v12  ;;  %v3264_v50 = vunpack.i.h.bf16 %v3262_v62 }
 0x201   : > { %v2104_v7 = vadd.f32 %v2103_v18, %v2015_v44  ;;  %2145 = vmatmul.bf16.gmra.mxu2 %v1785_v38  ;;  %v3237_v61 = vpop.permute.xlu0 %3236 }
 0x202   : > { %v3242_v48 = vpop.permute.xlu1 %3241  ;;  %v3238_v49 = vunpack.i.l.bf16 %v3237_v61  ;;  %v3239_v5 = vunpack.i.h.bf16 %v3237_v61 }
 0x203   : > { %v2193_v25 = vadd.f32 %v4769_v31, %v2104_v7  ;;  %v3244_v55 = vunpack.i.h.bf16 %v3242_v48  ;;  %v3243_v24 = vunpack.i.l.bf16 %v3242_v48 }
 0x204   : > { %v2106_v58 = vpop.f32.mrf.mxu2  ;;  %v1647_v2 = vsel %vm1625_vm5, %v1615_v14, %v3238_v49  ;;  %v1586_v49 = vsel %vm1565_vm3, %v5244_v37, %v3248_v39 }
 0x205   : > { %v2268_v40 = vmax.f32 %v2193_v25, 0.0  ;;  %v1681_v56 = vsel %vm1565_vm3, %v5242_v54, %v3244_v55  ;;  %v1680_v31 = vsel %vm1565_vm3, %v5243_v34, %v3243_v24  ;;  %v1784_v18 = vpack.c.bf16 %v1647_v2, %v1646_v45  ;;  %v4864_v25 = vpop.permute.xlu2 %3276 }
 0x206   : > { %v2017_v46 = vpop.f32.mrf.mxu1  ;;  %v1712_v9 = vsel %vm1595_vm4, %v1680_v31, %v3234_v15  ;;  %v1713_v28 = vsel %vm1595_vm4, %v1681_v56, %v4425_v53  ;;  %v4875_v31 = vpop.f32.mrf.mxu0 }
 0x207   : > { %v2298_v52 = vpack.c.bf16 %v2268_v40, %v2267_v23  ;;  %v2018_v13 = vadd.f32 %v4777_v19, %v2017_v46  ;;  %v1744_v35 = vsel %vm1625_vm5, %v1712_v9, %v3239_v5  ;;  %v1745_v21 = vsel %vm1625_vm5, %v1713_v28, %v4423_v10  ;;  %v4883_v12 = vpop.f32.mrf.mxu3 }
 0x208   : > { %v1788_v26 = vpack.c.bf16 %v1745_v21, %v1744_v35  ;;  %v3263_v46 = vunpack.i.l.bf16 %v3262_v62 }
 0x209   : > { %2056 = vmatmul.bf16.gmra.mxu1 %v1784_v18  ;;  %2795 = vmatmul.msk.bf16.gmra.mxu3 %vm1565_vm3, %v2298_v52  ;;  %v3252_v44 = vpop.permute.xlu0 %3251  ;;  %v2107_v7 = vadd.f32 %v2106_v58, %v2018_v13 }
 0x20a   : > { %v3257_v38 = vpop.permute.xlu1 %3256  ;;  %v3254_v47 = vunpack.i.h.bf16 %v3252_v44  ;;  %v3253_v36 = vunpack.i.l.bf16 %v3252_v44  ;;  %v1683_v44 = vsel %vm1565_vm3, %v4525_v3, %v3264_v50 }
 0x20b   : > { %v3259_v55 = vunpack.i.h.bf16 %v3257_v38  ;;  %v3258_v24 = vunpack.i.l.bf16 %v3257_v38  ;;  %v2196_v58 = vadd.f32 %v4792_v30, %v2107_v7 }
 0x20c   : > { %v2108_v29 = vpop.f32.mrf.mxu2  ;;  %v1617_v23 = vsel %vm1595_vm4, %v1587_v63, %v3254_v47  ;;  %v1616_v14 = vsel %vm1595_vm4, %v1586_v49, %v3253_v36  ;;  %v3278_v47 = vunpack.i.l.bf16 %v4864_v25 }
 0x20d   : > { %v1648_v2 = vsel %vm1625_vm5, %v1616_v14, %v3258_v24  ;;  %v1649_v15 = vsel %vm1625_vm5, %v1617_v23, %v3259_v55  ;;  %v2269_v30 = vmax.f32 %v2196_v58, 0.0  ;;  %v4885_v39 = vpop.permute.xlu2 %3291 }
 0x20e   : > { %v2019_v48 = vpop.f32.mrf.mxu1  ;;  %v1787_v28 = vpack.c.bf16 %v1649_v15, %v1648_v2  ;;  %v4894_v63 = vpop.f32.mrf.mxu0  ;;  %v1588_v24 = vsel %vm1565_vm3, %v4415_v16, %v3278_v47 }
 0x20f   : > { %v2020_v61 = vadd.f32 %v4777_v19, %v2019_v48  ;;  %v4905_v2 = vpop.f32.mrf.mxu3 }
 0x211   : > { %v2109_v40 = vadd.f32 %v2108_v29, %v2020_v61  ;;  %2150 = vmatmul.bf16.gmra.mxu2 %v1788_v26  ;;  %v3267_v54 = vpop.permute.xlu0 %3266 }
 0x212   : > { %v3272_v56 = vpop.permute.xlu1 %3271  ;;  %v3269_v18 = vunpack.i.h.bf16 %v3267_v54  ;;  %v3268_v52 = vunpack.i.l.bf16 %v3267_v54 }
 0x213   : > { %v2198_v34 = vadd.f32 %v4809_v33, %v2109_v40  ;;  %v1682_v33 = vsel %vm1565_vm3, %v4554_v43, %v3263_v46  ;;  %v3274_v38 = vunpack.i.h.bf16 %v3272_v56  ;;  %v3273_v62 = vunpack.i.l.bf16 %v3272_v56 }
 0x214   : > { %v2111_v45 = vpop.f32.mrf.mxu2  ;;  %v1715_v29 = vsel %vm1595_vm4, %v1683_v44, %v3269_v18  ;;  %v1714_v35 = vsel %vm1595_vm4, %v1682_v33, %v3268_v52 }
 0x215   : > { %v2270_v13 = vmax.f32 %v2198_v34, 0.0  ;;  %v1746_v36 = vsel %vm1625_vm5, %v1714_v35, %v3273_v62  ;;  %v1747_v48 = vsel %vm1625_vm5, %v1715_v29, %v3274_v38  ;;  %v4901_v50 = vpop.permute.xlu2 %3306 }
 0x216   : > { %v2022_v9 = vpop.f32.mrf.mxu1  ;;  %v1791_v55 = vpack.c.bf16 %v1747_v48, %v1746_v36 }
 0x217   : > { %v2299_v5 = vpack.c.bf16 %v2270_v13, %v2269_v30  ;;  %v2023_v21 = vadd.f32 %v4777_v19, %v2022_v9  ;;  %v3279_v13 = vunpack.i.h.bf16 %v4864_v25 }
 0x219   : > { %2061 = vmatmul.bf16.gmra.mxu1 %v1787_v28  ;;  %2796 = vmatmul.msk.bf16.gmra.mxu3 %vm1565_vm3, %v2299_v5  ;;  %v3282_v7 = vpop.permute.xlu0 %3281  ;;  %v2112_v61 = vadd.f32 %v2111_v45, %v2023_v21  ;;  %v3293_v45 = vunpack.i.l.bf16 %v4885_v39  ;;  %v1684_v25 = vsel %vm1565_vm3, %v4519_v60, %v3279_v13 }
 0x21a   : > { %v3287_v3 = vpop.permute.xlu1 %3286  ;;  %v3283_v26 = vunpack.i.l.bf16 %v3282_v7  ;;  %v3284_v28 = vunpack.i.h.bf16 %v3282_v7 }
 0x21b   : > { %v3289_v58 = vunpack.i.h.bf16 %v3287_v3  ;;  %v3288_v23 = vunpack.i.l.bf16 %v3287_v3  ;;  %v2201_v14 = vadd.f32 %v4828_v6, %v2112_v61  ;;  %v1685_v33 = vsel %vm1565_vm3, %v4602_v0, %v3293_v45 }
 0x21c   : > { %v2113_v43 = vpop.f32.mrf.mxu2  ;;  %v1618_v40 = vsel %vm1595_vm4, %v1588_v24, %v3283_v26  ;;  %v1716_v7 = vsel %vm1595_vm4, %v1684_v25, %v3284_v28  ;;  %v3308_v3 = vunpack.i.l.bf16 %v4901_v50  ;;  %v3294_v26 = vunpack.i.h.bf16 %v4885_v39 }
 0x21d   : > { %v1650_v16 = vsel %vm1625_vm5, %v4213_v11, %v3288_v23  ;;  %v1651_v6 = vsel %vm1625_vm5, %v1618_v40, %v3289_v58  ;;  %v2271_v30 = vmax.f32 %v2201_v14, 0.0  ;;  %v4924_v36 = vpop.permute.xlu2 %3321 }
 0x21e   : > { %v2024_v37 = vpop.f32.mrf.mxu1  ;;  %v1790_v5 = vpack.c.bf16 %v1651_v6, %v1650_v16  ;;  %v1590_v58 = vsel %vm1565_vm3, %v4349_v32, %v3308_v3  ;;  %v1589_v39 = vsel %vm1565_vm3, %v4352_v41, %v3294_v26  ;;  %v3323_v32 = vunpack.i.l.bf16 %v4924_v36 }
 0x21f   : > { %v2025_v49 = vadd.f32 %v4777_v19, %v2024_v37  ;;  %v4927_v37 = vpop.f32.mrf.mxu3  ;;  %v3324_v26 = vunpack.i.h.bf16 %v4924_v36 }
 0x221   : > { %v2114_v54 = vadd.f32 %v2113_v43, %v2025_v49  ;;  %2155 = vmatmul.bf16.gmra.mxu2 %v1791_v55  ;;  %v3297_v56 = vpop.permute.xlu0 %3296  ;;  %v1591_v36 = vsel %vm1565_vm3, %v4445_v59, %v3324_v26 }
 0x222   : > { %v3302_v34 = vpop.permute.xlu1 %3301  ;;  %v3298_v18 = vunpack.i.l.bf16 %v3297_v56  ;;  %v3299_v49 = vunpack.i.h.bf16 %v3297_v56 }
 0x223   : > { %v2203_v46 = vadd.f32 %v4850_v51, %v2114_v54  ;;  %v4911_v51 = vpop.f32.mrf.mxu0  ;;  %v3304_v38 = vunpack.i.h.bf16 %v3302_v34  ;;  %v3303_v62 = vunpack.i.l.bf16 %v3302_v34 }
 0x224   : > { %v2116_v15 = vpop.f32.mrf.mxu2  ;;  %v1717_v11 = vsel %vm1595_vm4, %v1685_v33, %v3298_v18  ;;  %v1619_v56 = vsel %vm1595_vm4, %v1589_v39, %v3299_v49 }
 0x225   : > { %v2272_v52 = vmax.f32 %v2203_v46, 0.0  ;;  %v1748_v0 = vsel %vm1625_vm5, %v1716_v7, %v3303_v62  ;;  %v1749_v43 = vsel %vm1625_vm5, %v1717_v11, %v3304_v38  ;;  %v3337_v41 = vpop.permute.xlu2 %3336 }
 0x226   : > { %v2027_v9 = vpop.f32.mrf.mxu1  ;;  %v1794_v24 = vpack.c.bf16 %v1749_v43, %v1748_v0  ;;  %v3338_v3 = vunpack.i.l.bf16 %v3337_v41 }
 0x227   : > { %v2300_v44 = vpack.c.bf16 %v2272_v52, %v2271_v30  ;;  %v2028_v29 = vadd.f32 %v4777_v19, %v2027_v9  ;;  %v3309_v9 = vunpack.i.h.bf16 %v4901_v50  ;;  %v4944_v38 = vpop.f32.mrf.mxu3 }
 0x229   : > { %2066 = vmatmul.bf16.gmra.mxu1 %v1790_v5  ;;  %2797 = vmatmul.msk.bf16.gmra.mxu3 %vm1565_vm3, %v2300_v44  ;;  %v3312_v35 = vpop.permute.xlu0 %3311  ;;  %v2117_v48 = vadd.f32 %v2116_v15, %v2028_v29  ;;  %v1686_v50 = vsel %vm1565_vm3, %v4605_v1, %v3309_v9 }
 0x22a   : > { %v3317_v21 = vpop.permute.xlu1 %3316  ;;  %v3313_v61 = vunpack.i.l.bf16 %v3312_v35  ;;  %v3314_v5 = vunpack.i.h.bf16 %v3312_v35 }
 0x22b   : > { %v3319_v23 = vunpack.i.h.bf16 %v3317_v21  ;;  %v3318_v14 = vunpack.i.l.bf16 %v3317_v21  ;;  %v2206_v40 = vadd.f32 %v4875_v31, %v2117_v48  ;;  %v2212_v46 = vpop.f32.mrf.mxu0 }
 0x22c   : > { %v2118_v47 = vpop.f32.mrf.mxu2  ;;  %v1620_v54 = vsel %vm1595_vm4, %v1590_v58, %v3313_v61  ;;  %v1718_v21 = vsel %vm1595_vm4, %v1686_v50, %v3314_v5 }
 0x22d   : > { %v1652_v30 = vsel %vm1625_vm5, %v1619_v56, %v3318_v14  ;;  %v1653_v31 = vsel %vm1625_vm5, %v1620_v54, %v3319_v23  ;;  %v2273_v18 = vmax.f32 %v2206_v40, 0.0  ;;  %v3352_v14 = vpop.permute.xlu2 %3351 }
 0x22e   : > { %v2029_v60 = vpop.f32.mrf.mxu1  ;;  %v1793_v44 = vpack.c.bf16 %v1653_v31, %v1652_v30 }
 0x22f   : > { %v2030_v55 = vadd.f32 %v4777_v19, %v2029_v60  ;;  %v4962_v39 = vpop.f32.mrf.mxu3 }
 0x231   : > { %v2119_v34 = vadd.f32 %v2118_v47, %v2030_v55  ;;  %2160 = vmatmul.bf16.gmra.mxu2 %v1794_v24  ;;  %v3327_v45 = vpop.permute.xlu0 %3326  ;;  %v1592_v24 = vsel %vm1565_vm3, %v4454_v17, %v3338_v3 }
 0x232   : > { %v3332_v16 = vpop.permute.xlu1 %3331  ;;  %v3328_v13 = vunpack.i.l.bf16 %v3327_v45  ;;  %v3329_v49 = vunpack.i.h.bf16 %v3327_v45 }
 0x233   : > { %v2208_v15 = vadd.f32 %v4894_v63, %v2119_v34  ;;  %v1687_v63 = vsel %vm1565_vm3, %v4670_v20, %v3323_v32  ;;  %v3334_v62 = vunpack.i.h.bf16 %v3332_v16  ;;  %v3333_v11 = vunpack.i.l.bf16 %v3332_v16  ;;  %v2215_v7 = vpop.f32.mrf.mxu0 }
 0x234   : > { %v2121_v6 = vpop.f32.mrf.mxu2  ;;  %v1719_v29 = vsel %vm1595_vm4, %v1687_v63, %v3328_v13  ;;  %v1621_v45 = vsel %vm1595_vm4, %v1591_v36, %v3329_v49 }
 0x235   : > { %v2274_v52 = vmax.f32 %v2208_v15, 0.0  ;;  %v1750_v47 = vsel %vm1625_vm5, %v1718_v21, %v3333_v11  ;;  %v1751_v0 = vsel %vm1625_vm5, %v1719_v29, %v3334_v62  ;;  %v3353_v15 = vunpack.i.l.bf16 %v3352_v14 }
 0x236   : > { %v2032_v28 = vpop.f32.mrf.mxu1  ;;  %v1797_v1 = vpack.c.bf16 %v1751_v0, %v1750_v47 }
 0x237   : > { %v2301_v33 = vpack.c.bf16 %v2274_v52, %v2273_v18  ;;  %v2033_v25 = vadd.f32 %v4777_v19, %v2032_v28  ;;  %v3339_v18 = vunpack.i.h.bf16 %v3337_v41  ;;  %v1689_v28 = vsel %vm1565_vm3, %v4721_v8, %v3353_v15  ;;  %v4976_v63 = vpop.f32.mrf.mxu3 }
 0x238   : > { %v1721_v41 = vsel %vm1595_vm4, %v1689_v28, %v4425_v53 }
 0x239   : > { %2071 = vmatmul.bf16.gmra.mxu1 %v1793_v44  ;;  %2798 = vmatmul.msk.bf16.gmra.mxu3 %vm1565_vm3, %v2301_v33  ;;  %v3342_v35 = vpop.permute.xlu0 %3341  ;;  %v2122_v43 = vadd.f32 %v2121_v6, %v2033_v25  ;;  %v1688_v44 = vsel %vm1565_vm3, %v4673_v4, %v3339_v18  ;;  %v3362_v25 = vpop.permute.xlu2 %3361 }
 0x23a   : > { %v3343_v48 = vunpack.i.l.bf16 %v3342_v35  ;;  %v3347_v61 = vpop.permute.xlu1 %3346  ;;  %v3344_v13 = vunpack.i.h.bf16 %v3342_v35  ;;  %v1753_v35 = vsel %vm1625_vm5, %v1721_v41, %v4423_v10  ;;  %v3364_v47 = vunpack.i.h.bf16 %v3362_v25 }
 0x23b   : > { %v3349_v58 = vunpack.i.h.bf16 %v3347_v61  ;;  %v3348_v23 = vunpack.i.l.bf16 %v3347_v61  ;;  %v2211_v40 = vadd.f32 %v4911_v51, %v2122_v43  ;;  %v2217_v31 = vpop.f32.mrf.mxu0  ;;  %v3363_v0 = vunpack.i.l.bf16 %v3362_v25 }
 0x23c   : > { %v2123_v20 = vpop.f32.mrf.mxu2  ;;  %v1622_v54 = vsel %vm1595_vm4, %v1592_v24, %v3343_v48  ;;  %v1720_v33 = vsel %vm1595_vm4, %v1688_v44, %v3344_v13 }
 0x23d   : > { %v1654_v17 = vsel %vm1625_vm5, %v1621_v45, %v3348_v23  ;;  %v1655_v32 = vsel %vm1625_vm5, %v1622_v54, %v3349_v58  ;;  %v2275_v6 = vmax.f32 %v2211_v40, 0.0 }
 0x23e   : > { %v2034_v60 = vpop.f32.mrf.mxu1  ;;  %v1796_v9 = vpack.c.bf16 %v1655_v32, %v1654_v17 }
 0x23f   : > { %v2035_v55 = vadd.f32 %v4777_v19, %v2034_v60  ;;  %v4989_v23 = vpop.f32.mrf.mxu3 }
 0x241   : > { %v2124_v34 = vadd.f32 %v2123_v20, %v2035_v55  ;;  %2165 = vmatmul.bf16.gmra.mxu2 %v1797_v1  ;;  %v3357_v30 = vpop.permute.xlu0 %3356  ;;  %v3354_v20 = vunpack.i.h.bf16 %v3352_v14 }
 0x242   : > { %v3358_v5 = vunpack.i.l.bf16 %v3357_v30  ;;  %v902_v8 = vpop.permute.xlu1 %901  ;;  %v3359_v26 = vunpack.i.h.bf16 %v3357_v30 }
 0x243   : > { %v2213_v56 = vadd.f32 %v2212_v46, %v2124_v34  ;;  %v2220_v3 = vpop.f32.mrf.mxu0  ;;  %v1594_v53 = vsel %vm1565_vm3, %v4541_v27, %v902_v8  ;;  %v1593_v10 = vsel %vm1565_vm3, %v4535_v42, %v3354_v20  ;;  %v5009_v20 = vld [vmem:[%s5184_s6] ss:$0 sm:$0xff] }
 0x244   : > { %v2126_v16 = vpop.f32.mrf.mxu2  ;;  %v1752_v11 = vsel %vm1625_vm5, %v1720_v33, %v3358_v5  ;;  %v1624_v60 = vsel %vm1595_vm4, %v1594_v53, %v3364_v47  ;;  %v1623_v24 = vsel %vm1595_vm4, %v1593_v10, %v3363_v0 }
 0x245   : > { %v2276_v51 = vmax.f32 %v2213_v56, 0.0  ;;  %v1800_v4 = vpack.c.bf16 %v1753_v35, %v1752_v11 }
 0x246   : > { %v2037_v52 = vpop.f32.mrf.mxu1 }
 0x247   : > { %v2302_v59 = vpack.c.bf16 %v2276_v51, %v2275_v6  ;;  %v2038_v46 = vadd.f32 %v4777_v19, %v2037_v52 }
 0x249   : > { %2076 = vmatmul.bf16.gmra.mxu1 %v1796_v9  ;;  %2799 = vmatmul.msk.bf16.gmra.mxu3 %vm1565_vm3, %v2302_v59  ;;  %v2127_v29 = vadd.f32 %v2126_v16, %v2038_v46  ;;  %v1173_v48 = vpop.permute.xlu0 %1172  ;;  %v4995_v16 = vpop.f32.mrf.mxu3 }
 0x24a   : > { %v1657_v55 = vsel %vm1625_vm5, %v1624_v60, %v1173_v48 }
 0x24b   : > { %v2216_v43 = vadd.f32 %v2215_v7, %v2127_v29  ;;  %v1656_v7 = vsel %vm1625_vm5, %v1623_v24, %v3359_v26  ;;  %v2222_v42 = vpop.f32.mrf.mxu0 }
 0x24c   : > { %v2128_v62 = vpop.f32.mrf.mxu2  ;;  %v1799_v40 = vpack.c.bf16 %v1657_v55, %v1656_v7 }
 0x24d   : > { %v2277_v58 = vmax.f32 %v2216_v43, 0.0 }
 0x24e   : > { %v2039_v50 = vpop.f32.mrf.mxu1 }
 0x24f   : > { %v2040_v21 = vadd.f32 %v4777_v19, %v2039_v50 }
 0x251   : > { %v2129_v61 = vadd.f32 %v2128_v62, %v2040_v21  ;;  %2170 = vmatmul.bf16.gmra.mxu2 %v1800_v4  ;;  %v4999_v59 = vpop.f32.mrf.mxu3 }
 0x253   : > { %v2218_v49 = vadd.f32 %v2217_v31, %v2129_v61  ;;  %v2225_v51 = vpop.f32.mrf.mxu0  ;;  %v3369_v61 = vld [vmem:[%s3640_s16] sm:$0xff] }
 0x254   : > { %v2131_v1 = vpop.f32.mrf.mxu2 }
 0x255   : > { %v2278_v27 = vmax.f32 %v2218_v49, 0.0 }
 0x256   : > { %v2042_v14 = vpop.f32.mrf.mxu1 }
 0x257   : > { %v2303_v54 = vpack.c.bf16 %v2278_v27, %v2277_v58  ;;  %v2043_v34 = vadd.f32 %v4777_v19, %v2042_v14 }
 0x259   : > { %2081 = vmatmul.bf16.gmra.mxu1 %v1799_v40  ;;  %2800 = vmatmul.msk.bf16.gmra.mxu3 %vm1565_vm3, %v2303_v54  ;;  %v2132_v45 = vadd.f32 %v2131_v1, %v2043_v34  ;;  %v5002_v8 = vpop.f32.mrf.mxu3 }
 0x25b   : > { %v2221_v17 = vadd.f32 %v2220_v3, %v2132_v45  ;;  %v2227_v46 = vpop.f32.mrf.mxu0 }
 0x25c   : > { %v2133_v36 = vpop.f32.mrf.mxu2 }
 0x25d   : > { %v2279_v31 = vmax.f32 %v2221_v17, 0.0 }
 0x25e   : > { %v2044_v56 = vpop.f32.mrf.mxu1 }
 0x25f   : > { %v2045_v15 = vadd.f32 %v4777_v19, %v2044_v56 }
 0x261   : > { %v2134_v32 = vadd.f32 %v2133_v36, %v2045_v15 }
 0x263   : > { %v2223_v6 = vadd.f32 %v2222_v42, %v2134_v32  ;;  %v2230_v4 = vpop.f32.mrf.mxu0  ;;  %v3370_v42 = vld [vmem:[%s3640_s16 + $0x8] sm:$0xff] }
 0x264   : > { %v2136_v30 = vpop.f32.mrf.mxu2 }
 0x265   : > { %v2280_v18 = vmax.f32 %v2223_v6, 0.0 }
 0x266   : > { %v2047_v52 = vpop.f32.mrf.mxu1 }
 0x267   : > { %v2304_v13 = vpack.c.bf16 %v2280_v18, %v2279_v31  ;;  %v2048_v9 = vadd.f32 %v4777_v19, %v2047_v52 }
 0x269   : > { %2801 = vmatmul.msk.bf16.gmra.mxu3 %vm1565_vm3, %v2304_v13  ;;  %v2137_v5 = vadd.f32 %v2136_v30, %v2048_v9  ;;  %v3371_v30 = vld [vmem:[%s3640_s16 + $0x10] sm:$0xff] }
 0x26b   : > { %v2226_v41 = vadd.f32 %v2225_v51, %v2137_v5  ;;  %v2232_v1 = vpop.f32.mrf.mxu0 }
 0x26c   : > { %v2138_v28 = vpop.f32.mrf.mxu2 }
 0x26d   : > { %v2281_v25 = vmax.f32 %v2226_v41, 0.0 }
 0x26e   : > { %v2049_v44 = vpop.f32.mrf.mxu1 }
 0x26f   : > { %v2050_v33 = vadd.f32 %v4777_v19, %v2049_v44 }
 0x271   : > { %v2139_v62 = vadd.f32 %v2138_v28, %v2050_v33 }
 0x273   : > { %v2228_v11 = vadd.f32 %v2227_v46, %v2139_v62 }
 0x274   : > { %v2141_v29 = vpop.f32.mrf.mxu2 }
 0x275   : > { %v2282_v50 = vmax.f32 %v2228_v11, 0.0 }
 0x276   : > { %v2052_v35 = vpop.f32.mrf.mxu1 }
 0x277   : > { %v2305_v21 = vpack.c.bf16 %v2282_v50, %v2281_v25  ;;  %v2053_v3 = vadd.f32 %v4777_v19, %v2052_v35 }
 0x279   : > { %2802 = vmatmul.msk.bf16.gmra.mxu3 %vm1565_vm3, %v2305_v21  ;;  %v2142_v0 = vadd.f32 %v2141_v29, %v2053_v3  ;;  %v3372_v29 = vld [vmem:[%s3640_s16 + $0x18] sm:$0xff] }
 0x27b   : > { %v2231_v49 = vadd.f32 %v2230_v4, %v2142_v0 }
 0x27c   : > { %v2143_v53 = vpop.f32.mrf.mxu2  ;;  %v2390_v47 = vpop.f32.mrf.mxu3 }
 0x27d   : > { %v2391_v43 = vadd.f32 %v5009_v20, %v2390_v47  ;;  %v2283_v7 = vmax.f32 %v2231_v49, 0.0 }
 0x27e   : > { %v2054_v48 = vpop.f32.mrf.mxu1 }
 0x27f   : > { %v2470_v26 = vadd.f32 %v3369_v61, %v2391_v43  ;;  %v2055_v60 = vadd.f32 %v4777_v19, %v2054_v48 }
 0x281   : > { %v2502_v10 = vmax.f32 %v2470_v26, 0.0  ;;  %v2144_v55 = vadd.f32 %v2143_v53, %v2055_v60  ;;  %v3373_v53 = vld [vmem:[%s3640_s16 + $0x20] sm:$0xff] }
 0x283   : > { %2534 = vst [vmem:[%s5016_s17] sm:$0xff] %v2502_v10  ;;  %v2233_v24 = vadd.f32 %v2232_v1, %v2144_v55 }
 0x284   : > { %v2146_v58 = vpop.f32.mrf.mxu2  ;;  %v2392_v27 = vpop.f32.mrf.mxu3 }
 0x285   : > { %v2284_v14 = vmax.f32 %v2233_v24, 0.0  ;;  %v2393_v40 = vadd.f32 %v5009_v20, %v2392_v27  ;;  %v3374_v27 = vld [vmem:[%s3640_s16 + $0x28] sm:$0xff] }
 0x286   : > { %v2057_v54 = vpop.f32.mrf.mxu1 }
 0x287   : > { %v2306_v34 = vpack.c.bf16 %v2284_v14, %v2283_v7  ;;  %v2471_v36 = vadd.f32 %v3370_v42, %v2393_v40  ;;  %v2058_v56 = vadd.f32 %v4777_v19, %v2057_v54 }
 0x289   : > { %v2503_v45 = vmax.f32 %v2471_v36, 0.0  ;;  %2803 = vmatmul.msk.bf16.gmra.mxu3 %vm1565_vm3, %v2306_v34  ;;  %v2147_v32 = vadd.f32 %v2146_v58, %v2058_v56  ;;  %v3375_v36 = vld [vmem:[%s3640_s16 + $0x30] sm:$0xff] }
 0x28b   : > { %2535 = vst [vmem:[%s5016_s17 + $0x8] sm:$0xff] %v2503_v45  ;;  %v2236_v52 = vadd.f32 %v4840_v22, %v2147_v32 }
 0x28c   : > { %v2148_v15 = vpop.f32.mrf.mxu2  ;;  %v2395_v17 = vpop.f32.mrf.mxu3 }
 0x28d   : > { %v2396_v6 = vadd.f32 %v5009_v20, %v2395_v17  ;;  %v2285_v44 = vmax.f32 %v2236_v52, 0.0 }
 0x28e   : > { %v2059_v51 = vpop.f32.mrf.mxu1 }
 0x28f   : > { %v2472_v31 = vadd.f32 %v3371_v30, %v2396_v6  ;;  %v2060_v18 = vadd.f32 %v4777_v19, %v2059_v51 }
 0x291   : > { %v2504_v13 = vmax.f32 %v2472_v31, 0.0  ;;  %v2149_v9 = vadd.f32 %v2148_v15, %v2060_v18 }
 0x293   : > { %2536 = vst [vmem:[%s5016_s17 + $0x10] sm:$0xff] %v2504_v13  ;;  %v2238_v28 = vadd.f32 %v4862_v57, %v2149_v9 }
 0x294   : > { %v2151_v5 = vpop.f32.mrf.mxu2  ;;  %v2397_v46 = vpop.f32.mrf.mxu3 }
 0x295   : > { %v2286_v33 = vmax.f32 %v2238_v28, 0.0  ;;  %v2398_v41 = vadd.f32 %v5009_v20, %v2397_v46  ;;  %v3376_v28 = vld [vmem:[%s3640_s16 + $0x38] sm:$0xff] }
 0x296   : > { %v2062_v62 = vpop.f32.mrf.mxu1 }
 0x297   : > { %v2307_v11 = vpack.c.bf16 %v2286_v33, %v2285_v44  ;;  %v2473_v25 = vadd.f32 %v3372_v29, %v2398_v41  ;;  %v2063_v22 = vadd.f32 %v4777_v19, %v2062_v62 }
 0x299   : > { %v2505_v50 = vmax.f32 %v2473_v25, 0.0  ;;  %2804 = vmatmul.msk.bf16.gmra.mxu3 %vm1565_vm3, %v2307_v11  ;;  %v2152_v21 = vadd.f32 %v2151_v5, %v2063_v22  ;;  %v3377_v11 = vld [vmem:[%s3640_s16 + $0x40] sm:$0xff] }
 0x29b   : > { %2537 = vst [vmem:[%s5016_s17 + $0x18] sm:$0xff] %v2505_v50  ;;  %v2241_v43 = vadd.f32 %v4883_v12, %v2152_v21 }
 0x29c   : > { %v2153_v35 = vpop.f32.mrf.mxu2  ;;  %v2400_v57 = vpop.f32.mrf.mxu3 }
 0x29d   : > { %v2401_v4 = vadd.f32 %v5009_v20, %v2400_v57  ;;  %v2287_v10 = vmax.f32 %v2241_v43, 0.0 }
 0x29e   : > { %v2064_v3 = vpop.f32.mrf.mxu1 }
 0x29f   : > { %v2474_v47 = vadd.f32 %v3373_v53, %v2401_v4  ;;  %v2065_v0 = vadd.f32 %v4777_v19, %v2064_v3 }
 0x2a1   : > { %v2506_v48 = vmax.f32 %v2474_v47, 0.0  ;;  %v2154_v61 = vadd.f32 %v2153_v35, %v2065_v0 }
 0x2a3   : > { %2538 = vst [vmem:[%s5016_s17 + $0x20] sm:$0xff] %v2506_v48  ;;  %v2243_v26 = vadd.f32 %v4905_v2, %v2154_v61  ;;  %v3378_v48 = vld [vmem:[%s3640_s16 + $0x48] sm:$0xff] }
 0x2a4   : > { %v2156_v60 = vpop.f32.mrf.mxu2  ;;  %v2402_v49 = vpop.f32.mrf.mxu3 }
 0x2a5   : > { %v2288_v55 = vmax.f32 %v2243_v26, 0.0  ;;  %v2403_v1 = vadd.f32 %v5009_v20, %v2402_v49 }
 0x2a6   : > { %v2067_v24 = vpop.f32.mrf.mxu1 }
 0x2a7   : > { %v2308_v58 = vpack.c.bf16 %v2288_v55, %v2287_v10  ;;  %v2475_v7 = vadd.f32 %v3374_v27, %v2403_v1  ;;  %v2068_v12 = vadd.f32 %v4777_v19, %v2067_v24  ;;  %v3379_v1 = vld [vmem:[%s3640_s16 + $0x50] sm:$0xff] }
 0x2a9   : > { %v2507_v14 = vmax.f32 %v2475_v7, 0.0  ;;  %2805 = vmatmul.msk.bf16.gmra.mxu3 %vm1565_vm3, %v2308_v58  ;;  %v2157_v54 = vadd.f32 %v2156_v60, %v2068_v12 }
 0x2ab   : > { %2539 = vst [vmem:[%s5016_s17 + $0x28] sm:$0xff] %v2507_v14  ;;  %v2246_v15 = vadd.f32 %v4927_v37, %v2157_v54 }
 0x2ac   : > { %v2158_v40 = vpop.f32.mrf.mxu2  ;;  %v2405_v2 = vpop.f32.mrf.mxu3 }
 0x2ad   : > { %v2406_v34 = vadd.f32 %v5009_v20, %v2405_v2  ;;  %v2289_v31 = vmax.f32 %v2246_v15, 0.0 }
 0x2ae   : > { %v2069_v42 = vpop.f32.mrf.mxu1 }
 0x2af   : > { %v2476_v45 = vadd.f32 %v3375_v36, %v2406_v34  ;;  %v2070_v56 = vadd.f32 %v4777_v19, %v2069_v42 }
 0x2b1   : > { %v2508_v17 = vmax.f32 %v2476_v45, 0.0  ;;  %v2159_v32 = vadd.f32 %v2158_v40, %v2070_v56  ;;  %v3380_v56 = vld [vmem:[%s3640_s16 + $0x58] sm:$0xff] }
 0x2b3   : > { %2540 = vst [vmem:[%s5016_s17 + $0x30] sm:$0xff] %v2508_v17  ;;  %v2248_v6 = vadd.f32 %v4944_v38, %v2159_v32 }
 0x2b4   : > { %v2161_v51 = vpop.f32.mrf.mxu2  ;;  %v2407_v30 = vpop.f32.mrf.mxu3 }
 0x2b5   : > { %v2290_v18 = vmax.f32 %v2248_v6, 0.0  ;;  %v2408_v52 = vadd.f32 %v5009_v20, %v2407_v30  ;;  %v3382_v30 = vld [vmem:[%s3640_s16 + $0x60] sm:$0xff] }
 0x2b6   : > { %v2072_v13 = vpop.f32.mrf.mxu1 }
 0x2b7   : > { %v2309_v9 = vpack.c.bf16 %v2290_v18, %v2289_v31  ;;  %v2477_v5 = vadd.f32 %v3376_v28, %v2408_v52  ;;  %v2073_v37 = vadd.f32 %v4777_v19, %v2072_v13 }
 0x2b9   : > { %v2509_v46 = vmax.f32 %v2477_v5, 0.0  ;;  %2806 = vmatmul.msk.bf16.gmra.mxu3 %vm1565_vm3, %v2309_v9  ;;  %v2162_v33 = vadd.f32 %v2161_v51, %v2073_v37 }
 0x2bb   : > { %2541 = vst [vmem:[%s5016_s17 + $0x38] sm:$0xff] %v2509_v46  ;;  %v2251_v50 = vadd.f32 %v4962_v39, %v2162_v33 }
 0x2bc   : > { %v2163_v44 = vpop.f32.mrf.mxu2  ;;  %v2410_v38 = vpop.f32.mrf.mxu3 }
 0x2bd   : > { %v2411_v41 = vadd.f32 %v5009_v20, %v2410_v38  ;;  %v2291_v3 = vmax.f32 %v2251_v50, 0.0 }
 0x2be   : > { %v2074_v62 = vpop.f32.mrf.mxu1 }
 0x2bf   : > { %v2478_v29 = vadd.f32 %v3377_v11, %v2411_v41  ;;  %v2075_v25 = vadd.f32 %v4777_v19, %v2074_v62  ;;  %v3383_v41 = vld [vmem:[%s3640_s16 + $0x68] sm:$0xff] }
 0x2c1   : > { %v2510_v22 = vmax.f32 %v2478_v29, 0.0  ;;  %v2164_v35 = vadd.f32 %v2163_v44, %v2075_v25 }
 0x2c3   : > { %2542 = vst [vmem:[%s5016_s17 + $0x40] sm:$0xff] %v2510_v22  ;;  %v2253_v57 = vadd.f32 %v4976_v63, %v2164_v35 }
 0x2c4   : > { %v2166_v21 = vpop.f32.mrf.mxu2  ;;  %v2412_v4 = vpop.f32.mrf.mxu3 }
 0x2c5   : > { %v2292_v53 = vmax.f32 %v2253_v57, 0.0  ;;  %v2413_v47 = vadd.f32 %v5009_v20, %v2412_v4  ;;  %v3385_v57 = vld [vmem:[%s3640_s16 + $0x78] sm:$0xff] }
 0x2c6   : > { %v2077_v0 = vpop.f32.mrf.mxu1 }
 0x2c7   : > { %v2310_v43 = vpack.c.bf16 %v2292_v53, %v2291_v3  ;;  %v2479_v61 = vadd.f32 %v3378_v48, %v2413_v47  ;;  %v2078_v39 = vadd.f32 %v4777_v19, %v2077_v0  ;;  %v3386_v47 = vld [vmem:[%s3640_s16 + $0x80] sm:$0xff] }
 0x2c9   : > { %v2511_v26 = vmax.f32 %v2479_v61, 0.0  ;;  %2807 = vmatmul.msk.bf16.gmra.mxu3 %vm1565_vm3, %v2310_v43  ;;  %v2167_v49 = vadd.f32 %v2166_v21, %v2078_v39 }
 0x2cb   : > { %2543 = vst [vmem:[%s5016_s17 + $0x48] sm:$0xff] %v2511_v26  ;;  %v2256_v27 = vadd.f32 %v4989_v23, %v2167_v49  ;;  %v3381_v23 = vld [vmem:[%s5182_s4] ss:$0 sm:$0xff]  ;;  %v3387_v26 = vld [vmem:[%s3640_s16 + $0x88] sm:$0xff] }
 0x2cc   : > { %v2168_v60 = vpop.f32.mrf.mxu2  ;;  %v2415_v63 = vpop.f32.mrf.mxu3 }
 0x2cd   : > { %v2416_v10 = vadd.f32 %v5009_v20, %v2415_v63  ;;  %v2293_v2 = vmax.f32 %v2256_v27, 0.0  ;;  %v3389_v27 = vld [vmem:[%s3640_s16 + $0x98] sm:$0xff] }
 0x2ce   : > { %v2079_v55 = vpop.f32.mrf.mxu1 }
 0x2cf   : > { %v2480_v24 = vadd.f32 %v3379_v1, %v2416_v10  ;;  %v2080_v58 = vadd.f32 %v4777_v19, %v2079_v55  ;;  %v3388_v10 = vld [vmem:[%s3640_s16 + $0x90] sm:$0xff] }
 0x2d1   : > { %v2512_v7 = vmax.f32 %v2480_v24, 0.0  ;;  %v2169_v14 = vadd.f32 %v2168_v60, %v2080_v58 }
 0x2d3   : > { %2544 = vst [vmem:[%s5016_s17 + $0x50] sm:$0xff] %v2512_v7  ;;  %v2258_v12 = vadd.f32 %v4995_v16, %v2169_v14 }
 0x2d4   : > { %v2417_v40 = vpop.f32.mrf.mxu3  ;;  %v2171_v42 = vpop.f32.mrf.mxu2 }
 0x2d5   : > { %v2294_v54 = vmax.f32 %v2258_v12, 0.0  ;;  %v2418_v34 = vadd.f32 %v5009_v20, %v2417_v40 }
 0x2d6   : > { %v2082_v36 = vpop.f32.mrf.mxu1 }
 0x2d7   : > { %v2311_v45 = vpack.c.bf16 %v2294_v54, %v2293_v2  ;;  %v2481_v15 = vadd.f32 %v3380_v56, %v2418_v34  ;;  %v2083_v17 = vadd.f32 %v3381_v23, %v2082_v36  ;;  %v3390_v2 = vld [vmem:[%s3640_s16 + $0xa0] sm:$0xff] }
 0x2d9   : > { %v2513_v19 = vmax.f32 %v2481_v15, 0.0  ;;  %2808 = vmatmul.msk.bf16.gmra.mxu3 %vm1565_vm3, %v2311_v45  ;;  %v2172_v32 = vadd.f32 %v2171_v42, %v2083_v17  ;;  %v3391_v45 = vld [vmem:[%s3640_s16 + $0xa8] sm:$0xff]  ;;  %v3392_v17 = vld [vmem:[%s3640_s16 + $0xb0] sm:$0xff] }
 0x2db   : > { %2545 = vst [vmem:[%s5016_s17 + $0x58] sm:$0xff] %v2513_v19  ;;  %v2261_v13 = vadd.f32 %v4999_v59, %v2172_v32 }
 0x2dc   : > { %v2420_v16 = vpop.f32.mrf.mxu3  ;;  %v2173_v52 = vpop.f32.mrf.mxu2 }
 0x2dd   : > { %v2421_v6 = vadd.f32 %v5009_v20, %v2420_v16  ;;  %v2295_v37 = vmax.f32 %v2261_v13, 0.0 }
 0x2de   : > { %v2084_v51 = vpop.f32.mrf.mxu1 }
 0x2df   : > { %v2482_v31 = vadd.f32 %v3382_v30, %v2421_v6  ;;  %v2085_v18 = vadd.f32 %v3381_v23, %v2084_v51  ;;  %v3393_v30 = vld [vmem:[%s3640_s16 + $0xb8] sm:$0xff] }
 0x2e1   : > { %v2514_v9 = vmax.f32 %v2482_v31, 0.0  ;;  %v2174_v28 = vadd.f32 %v2173_v52, %v2085_v18 }
 0x2e3   : > { %2546 = vst [vmem:[%s5016_s17 + $0x60] sm:$0xff] %v2514_v9  ;;  %v2263_v5 = vadd.f32 %v5002_v8, %v2174_v28  ;;  %v3384_v8 = vld [vmem:[%s3640_s16 + $0x70] sm:$0xff]  ;;  %v3394_v9 = vld [vmem:[%s3640_s16 + $0xc0] sm:$0xff] }
 0x2e4   : > { %v2422_v46 = vpop.f32.mrf.mxu3 }
 0x2e5   : > { %v2296_v44 = vmax.f32 %v2263_v5, 0.0  ;;  %v2423_v38 = vadd.f32 %v5009_v20, %v2422_v46 }
 0x2e7   : > { %v2312_v33 = vpack.c.bf16 %v2296_v44, %v2295_v37  ;;  %v2483_v62 = vadd.f32 %v3383_v41, %v2423_v38  ;;  %v3395_v44 = vld [vmem:[%s3640_s16 + $0xc8] sm:$0xff] }
 0x2e9   : > { %v2515_v11 = vmax.f32 %v2483_v62, 0.0  ;;  %2809 = vmatmul.msk.bf16.gmra.mxu3 %vm1565_vm3, %v2312_v33 }
 0x2eb   : > { %2547 = vst [vmem:[%s5016_s17 + $0x68] sm:$0xff] %v2515_v11  ;;  %v3396_v11 = vld [vmem:[%s3640_s16 + $0xd0] sm:$0xff] }
 0x2ec   : > { %v2425_v59 = vpop.f32.mrf.mxu3 }
 0x2ed   : > { %v2426_v29 = vadd.f32 %v5009_v20, %v2425_v59 }
 0x2ef   : > { %v2484_v25 = vadd.f32 %v3384_v8, %v2426_v29 }
 0x2f1   : > { %v2516_v50 = vmax.f32 %v2484_v25, 0.0 }
 0x2f3   : > { %2548 = vst [vmem:[%s5016_s17 + $0x70] sm:$0xff] %v2516_v50  ;;  %v3397_v50 = vld [vmem:[%s3640_s16 + $0xd8] sm:$0xff] }
 0x2f4   : > { %v2427_v22 = vpop.f32.mrf.mxu3 }
 0x2f5   : > { %v2428_v35 = vadd.f32 %v5009_v20, %v2427_v22 }
 0x2f7   : > { %v2485_v21 = vadd.f32 %v3385_v57, %v2428_v35 }
 0x2f9   : > { %v2517_v4 = vmax.f32 %v2485_v21, 0.0 }
 0x2fb   : > { %2549 = vst [vmem:[%s5016_s17 + $0x78] sm:$0xff] %v2517_v4  ;;  %v3398_v4 = vld [vmem:[%s3640_s16 + $0xe0] sm:$0xff] }
 0x2fc   : > { %v2430_v3 = vpop.f32.mrf.mxu3 }
 0x2fd   : > { %v2431_v53 = vadd.f32 %v5009_v20, %v2430_v3 }
 0x2ff   : > { %v2486_v0 = vadd.f32 %v3386_v47, %v2431_v53 }
 0x301   : > { %v2518_v43 = vmax.f32 %v2486_v0, 0.0 }
 0x303   : > { %2550 = vst [vmem:[%s5016_s17 + $0x80] sm:$0xff] %v2518_v43  ;;  %v3399_v43 = vld [vmem:[%s3640_s16 + $0xe8] sm:$0xff] }
 0x304   : > { %v2432_v48 = vpop.f32.mrf.mxu3 }
 0x305   : > { %v2433_v61 = vadd.f32 %v5009_v20, %v2432_v48 }
 0x307   : > { %v2487_v39 = vadd.f32 %v3387_v26, %v2433_v61 }
 0x309   : > { %v2519_v60 = vmax.f32 %v2487_v39, 0.0 }
 0x30b   : > { %2551 = vst [vmem:[%s5016_s17 + $0x88] sm:$0xff] %v2519_v60  ;;  %v3400_v60 = vld [vmem:[%s3640_s16 + $0xf0] sm:$0xff] }
 0x30c   : > { %v2435_v63 = vpop.f32.mrf.mxu3 }
 0x30d   : > { %v2436_v49 = vadd.f32 %v5009_v20, %v2435_v63 }
 0x30f   : > { %v2488_v55 = vadd.f32 %v3388_v10, %v2436_v49 }
 0x311   : > { %v2520_v1 = vmax.f32 %v2488_v55, 0.0 }
 0x313   : > { %2552 = vst [vmem:[%s5016_s17 + $0x90] sm:$0xff] %v2520_v1  ;;  %v3401_v1 = vld [vmem:[%s3640_s16 + $0xf8] sm:$0xff] }
 0x314   : > { %v2437_v24 = vpop.f32.mrf.mxu3 }
 0x315   : > { %v2438_v58 = vadd.f32 %v5009_v20, %v2437_v24 }
 0x317   : > { %v2489_v7 = vadd.f32 %v3389_v27, %v2438_v58 }
 0x319   : > { %v2521_v14 = vmax.f32 %v2489_v7, 0.0 }
 0x31b   : > { %2553 = vst [vmem:[%s5016_s17 + $0x98] sm:$0xff] %v2521_v14 }
 0x31c   : > { %v2440_v12 = vpop.f32.mrf.mxu3 }
 0x31d   : > { %v2441_v40 = vadd.f32 %v5009_v20, %v2440_v12 }
 0x31f   : > { %v2490_v54 = vadd.f32 %v3390_v2, %v2441_v40 }
 0x321   : > { %v2522_v34 = vmax.f32 %v2490_v54, 0.0 }
 0x323   : > { %2554 = vst [vmem:[%s5016_s17 + $0xa0] sm:$0xff] %v2522_v34 }
 0x324   : > { %v2442_v42 = vpop.f32.mrf.mxu3 }
 0x325   : > { %v2443_v36 = vadd.f32 %v5009_v20, %v2442_v42 }
 0x327   : > { %v2491_v56 = vadd.f32 %v3391_v45, %v2443_v36 }
 0x329   : > { %v2523_v15 = vmax.f32 %v2491_v56, 0.0 }
 0x32b   : > { %2555 = vst [vmem:[%s5016_s17 + $0xa8] sm:$0xff] %v2523_v15 }
 0x32c   : > { %v2445_v19 = vpop.f32.mrf.mxu3 }
 0x32d   : > { %v2446_v23 = vadd.f32 %v5009_v20, %v2445_v19 }
 0x32f   : > { %v2492_v16 = vadd.f32 %v3392_v17, %v2446_v23 }
 0x331   : > { %v2524_v32 = vmax.f32 %v2492_v16, 0.0 }
 0x333   : > { %2556 = vst [vmem:[%s5016_s17 + $0xb0] sm:$0xff] %v2524_v32 }
 0x334   : > { %v2447_v6 = vpop.f32.mrf.mxu3 }
 0x335   : > { %v2448_v51 = vadd.f32 %v5009_v20, %v2447_v6 }
 0x337   : > { %v2493_v31 = vadd.f32 %v3393_v30, %v2448_v51 }
 0x339   : > { %v2525_v18 = vmax.f32 %v2493_v31, 0.0 }
 0x33b   : > { %2557 = vst [vmem:[%s5016_s17 + $0xb8] sm:$0xff] %v2525_v18 }
 0x33c   : > { %v2450_v52 = vpop.f32.mrf.mxu3 }
 0x33d   : > { %v2451_v13 = vadd.f32 %v5009_v20, %v2450_v52 }
 0x33f   : > { %v2494_v28 = vadd.f32 %v3394_v9, %v2451_v13 }
 0x341   : > { %v2526_v5 = vmax.f32 %v2494_v28, 0.0 }
 0x343   : > { %2558 = vst [vmem:[%s5016_s17 + $0xc0] sm:$0xff] %v2526_v5 }
 0x344   : > { %v2452_v46 = vpop.f32.mrf.mxu3 }
 0x345   : > { %v2453_v37 = vadd.f32 %v5009_v20, %v2452_v46 }
 0x347   : > { %v2495_v38 = vadd.f32 %v3395_v44, %v2453_v37 }
 0x349   : > { %v2527_v33 = vmax.f32 %v2495_v38, 0.0 }
 0x34b   : > { %2559 = vst [vmem:[%s5016_s17 + $0xc8] sm:$0xff] %v2527_v33 }
 0x34c   : > { %v2455_v41 = vpop.f32.mrf.mxu3 }
 0x34d   : > { %v2456_v62 = vadd.f32 %v5009_v20, %v2455_v41 }
 0x34f   : > { %v2496_v59 = vadd.f32 %v3396_v11, %v2456_v62 }
 0x351   : > { %v2528_v29 = vmax.f32 %v2496_v59, 0.0 }
 0x353   : > { %2560 = vst [vmem:[%s5016_s17 + $0xd0] sm:$0xff] %v2528_v29 }
 0x354   : > { %v2457_v8 = vpop.f32.mrf.mxu3 }
 0x355   : > { %v2458_v25 = vadd.f32 %v5009_v20, %v2457_v8 }
 0x357   : > { %v2497_v22 = vadd.f32 %v3397_v50, %v2458_v25 }
 0x359   : > { %v2529_v35 = vmax.f32 %v2497_v22, 0.0 }
 0x35b   : > { %2561 = vst [vmem:[%s5016_s17 + $0xd8] sm:$0xff] %v2529_v35 }
 0x35c   : > { %v2460_v57 = vpop.f32.mrf.mxu3 }
 0x35d   : > { %v2461_v21 = vadd.f32 %v5009_v20, %v2460_v57 }
 0x35f   : > { %v2498_v3 = vadd.f32 %v3398_v4, %v2461_v21 }
 0x361   : > { %v2530_v53 = vmax.f32 %v2498_v3, 0.0 }
 0x363   : > { %2562 = vst [vmem:[%s5016_s17 + $0xe0] sm:$0xff] %v2530_v53 }
 0x364   : > { %v2462_v47 = vpop.f32.mrf.mxu3 }
 0x365   : > { %v2463_v0 = vadd.f32 %v5009_v20, %v2462_v47 }
 0x367   : > { %v2499_v48 = vadd.f32 %v3399_v43, %v2463_v0 }
 0x369   : > { %v2531_v61 = vmax.f32 %v2499_v48, 0.0 }
 0x36b   : > { %2563 = vst [vmem:[%s5016_s17 + $0xe8] sm:$0xff] %v2531_v61 }
 0x36c   : > { %v2465_v26 = vpop.f32.mrf.mxu3 }
 0x36d   : > { %v2466_v39 = vadd.f32 %v5009_v20, %v2465_v26 }
 0x36f   : > { %v2500_v63 = vadd.f32 %v3400_v60, %v2466_v39 }
 0x371   : > { %v2532_v49 = vmax.f32 %v2500_v63, 0.0 }
 0x373   : > { %2564 = vst [vmem:[%s5016_s17 + $0xf0] sm:$0xff] %v2532_v49 }
 0x374   : > { %v2467_v10 = vpop.f32.mrf.mxu3 }
 0x375   : > { %v2468_v55 = vadd.f32 %v5009_v20, %v2467_v10 }
 0x377   : > { %v2501_v24 = vadd.f32 %v3401_v1, %v2468_v55 }
 0x379   : > { %v2533_v58 = vmax.f32 %v2501_v24, 0.0 }
 0x37b   : > { %2565 = vst [vmem:[%s5016_s17 + $0xf8] sm:$0xff] %v2533_v58 }
 0x37c   : > { %3459 = shalt.err (!%p3456_p4)
}
 0x37d   : > { %s3506_s22 = smov 128   ;;  %s3507_s16 = smov 8  }
 0x37e   : > { %2868 = dma.vmem_to_hbm [thread:$0]  (%p3598_p11), %s2581_s23, 4096, %s2583_s29, %s2567_s20, %s3506_s22, %s3506_s22, %s3507_s16  }
 0x37f PF: > { %s2597_s17 = sand.u32 1, %s3486_s24   ;;  %p5245_p7 = scmp.ge.s32.totalorder %s3498_s27, 2 }
 0x380   : > { %s2598_s18 = scalar_lea.sflag [#allocation4], %s2597_s17 }
 0x381   : > { %p2875_p5 = pnand %p5245_p7, %p3602_p12 }
 0x383   : > { %p2876_p8 = pneg %p2875_p5 }
 0x385   : > { %3481 = dma.done.wait (%p2876_p8), %s2598_s18, 4096  }
 0x386   : > { %3483 = vsyncadd (%p2876_p8), %s2598_s18, 4294963200  ;;  %s5246_s19 = sld [smem:[#allocation8_spill]]  ;;  %p20_p10 = scmp.ge.s32.totalorder %s3573_s30, 4  }
 0x387   : > { %s5247_s24 = smov %s3490_s25  ;;  %s5248_s25 = smov %s3494_s26 }
 0x388   : > { %s5250_s27 = smov %s3573_s30  ;;  %22 = sbr.rel (!%p20_p10) target bundleno = 5 (0x5), region = 93 }
 0x38c   : > { %s5249_s26 = smov %s5246_s19 }
 0x38d   :  { %2604 = vsyncpa [#allocation3], 1 }
 0x38e   :  { %2606 = vsyncpa [#allocation3 + $0x1], 1 }
 0x38f   :  { %2607 = vsyncpa [#allocation4], 1 }
 0x390   :  { %2609 = vsyncpa [#allocation4 + $0x1], 1 }

</bundles_post_ra>
